<compile_context>
chip_gen: v5e
topology: v5e:2x2
jax: 0.10.0
libtpu: 0.0.40
codegen_flags: <defaults>
</compile_context>

<pallas_src>
import functools

import jax
import jax.numpy as jnp
from jax.experimental import pallas as pl
from jax.experimental.pallas import tpu as pltpu

KS = (3, 5, 7, 9)   # k1..k4
PS = (1, 2, 3, 4)   # p1..p4
KMAX = 9


def _pick_tile(dim, candidates):
    """Largest candidate that divides dim, else the full dim (always a legal block)."""
    for c in candidates:
        if dim >= c and dim % c == 0:
            return c
    return dim


# ---------------------------- Pallas kernels ----------------------------

def _conv_kernel(x_ref, w_ref, bias_ref, o_ref, gap_ref, acc_ref, *,
                 lout, n_phase, n_taps, relu, pad_l, lout_total):
    """Direct 1D conv: per grid step accumulate all taps of one Cin tile into f32 scratch.

    x_ref   : (n_phase, Lph, tCin) bf16   phase-split input (phase r holds x_pad[m*stride + r])
    w_ref   : (n_taps, tCin, tCout) bf16  BN-folded fused branch weights
    bias_ref: (1, tCout) f32              BN-folded bias
    o_ref   : (lout_total, tCout) bf16    output (optionally pre-zero-padded rows for next conv)
    gap_ref : (1, tCout) f32              global average pool of the pre-activation output
    acc_ref : (lout, tCout) f32           VMEM accumulator (persists across the Cin grid axis)
    """
    kk = pl.program_id(2)

    @pl.when(kk == 0)
    def _():
        acc_ref[...] = jnp.zeros_like(acc_ref)

    part = None
    for t in range(n_taps):
        ph, sh = t % n_phase, t // n_phase
        a = x_ref[ph, pl.ds(sh, lout), :]                      # contiguous shifted window
        d = jnp.dot(a, w_ref[t], preferred_element_type=jnp.float32)
        part = d if part is None else part + d
    acc_ref[...] += part

    @pl.when(kk == pl.num_programs(2) - 1)
    def _():
        r = acc_ref[...] + bias_ref[...]
        gap_ref[...] = jnp.mean(r, axis=0, keepdims=True)      # fused GAP (pre-ReLU; conv2 has no ReLU)
        if relu:
            r = jnp.maximum(r, 0.0)
        r = r.astype(o_ref.dtype)
        if lout_total == lout:
            o_ref[...] = r
        else:
            o_ref[...] = jnp.zeros_like(o_ref)                 # pad rows are true zeros
            o_ref[pl.ds(pad_l, lout), :] = r


def _se_kernel(gap_ref, w1t_ref, w2t_ref, alpha_ref):
    """Tiny SE MLP: Linear -> ReLU -> Linear -> Sigmoid on the (N, C) pooled features."""
    h = jnp.maximum(jnp.dot(gap_ref[...], w1t_ref[...],
                            preferred_element_type=jnp.float32), 0.0)
    a = jnp.dot(h, w2t_ref[...], preferred_element_type=jnp.float32)
    alpha_ref[...] = jax.nn.sigmoid(a)


def _scale_add_relu_kernel(h_ref, alpha_ref, sc_ref, o_ref):
    # SE channel scaling + residual add + ReLU on a (tL, C) tile, channels lane-dense.
    o_ref[...] = jnp.maximum(
        h_ref[...].astype(jnp.float32) * alpha_ref[...]
        + sc_ref[...].astype(jnp.float32), 0.0)


def _maxpool_kernel(x_ref, o_ref, *, k):
    # x block: (k, Lout, C) phase-split windows -> elementwise max over the k phases.
    m = x_ref[0]
    for j in range(1, k):
        m = jnp.maximum(m, x_ref[j])
    o_ref[...] = m


# ---------------------------- conv wrapper ----------------------------

def fused_conv_bn(x_ph, w_taps, bias, *, lout, relu, out_pad=(0, 0)):
    """Fused BranchConv1D + eval-BN (+ optional ReLU) + GAP as one direct-conv pallas_call.

    x_ph  : (N, n_phase, Lph, Cin) bf16 (phase-split, already zero-padded for the taps)
    w_taps: (n_taps, Cin, Cout)    bf16 (BN scale folded in)
    bias  : (Cout,)                f32  (BN shift, incl. conv bias if any)
    Returns (out (N, pad_l+lout+pad_r, Cout) bf16 with zeroed pad rows, gap (N, 1, Cout) f32).
    """
    n, n_phase, lph, cin = x_ph.shape
    n_taps, _, cout = w_taps.shape
    assert lph >= lout + (n_taps - 1) // n_phase
    pad_l, pad_r = out_pad
    lout_total = pad_l + lout + pad_r

    tn = _pick_tile(cout, (512, 256, 128))
    tcin = _pick_tile(cin, (256, 128))

    kernel = functools.partial(_conv_kernel, lout=lout, n_phase=n_phase,
                               n_taps=n_taps, relu=relu, pad_l=pad_l,
                               lout_total=lout_total)
    # TODO(synk): for very long sequences the per-sample full-L blocks should be L-tiled
    # (halo handling) to stay inside the default scoped VMEM on v7x.
    out, gap = pl.pallas_call(
        kernel,
        out_shape=(jax.ShapeDtypeStruct((n, lout_total, cout), jnp.bfloat16),
                   jax.ShapeDtypeStruct((n, 1, cout), jnp.float32)),
        grid_spec=pltpu.PrefetchScalarGridSpec(
            num_scalar_prefetch=0,
            grid=(n, cout // tn, cin // tcin),
            in_specs=[
                pl.BlockSpec((None, n_phase, lph, tcin), lambda b, j, kk: (b, 0, 0, kk)),
                pl.BlockSpec((n_taps, tcin, tn), lambda b, j, kk: (0, kk, j)),
                pl.BlockSpec((1, tn), lambda b, j, kk: (0, j)),
            ],
            out_specs=(
                pl.BlockSpec((None, lout_total, tn), lambda b, j, kk: (b, 0, j)),
                pl.BlockSpec((None, 1, tn), lambda b, j, kk: (b, 0, j)),
            ),
            scratch_shapes=[pltpu.VMEM((lout, tn), jnp.float32)],
        ),
        compiler_params=pltpu.CompilerParams(
            dimension_semantics=("parallel", "parallel", "arbitrary")),
    )(x_ph, w_taps, bias.reshape(1, -1).astype(jnp.float32))
    return out, gap


# ---------------------------- weight / BN folding helpers ----------------------------

def _bn_fold(bn, conv_bias=None, eps=1e-5):
    gamma, beta, mean, var = bn
    scale = gamma / jnp.sqrt(var + eps)
    shift = beta - mean * scale
    if conv_bias is not None:
        shift = shift + conv_bias * scale
    return scale, shift


def _fused_branch_weight(weights, scale):
    """Embed each branch's (C4, Cin, k_i) kernel into KMAX taps, stack on out-channels,
    fold the BN scale, and return (KMAX, Cin, Cout) bf16 (tap, cin, cout ordering)."""
    cols = []
    for w, p in zip(weights, PS):
        c4, cin, _ = w.shape
        wpad = jnp.zeros((c4, cin, KMAX), jnp.float32)
        wpad = wpad.at[:, :, KMAX // 2 - p:KMAX // 2 + p + 1].set(w)
        cols.append(wpad)
    wfull = jnp.concatenate(cols, axis=0)                      # (Cout, Cin, KMAX)
    wfull = wfull * scale[:, None, None]
    # TODO(synk): on v5e the zero-padded taps waste ~33% of MACs; a per-branch tap loop /
    # branch-grouped Cout tiles would recover that on compute-bound generations.
    return jnp.transpose(wfull, (2, 1, 0)).astype(jnp.bfloat16)  # (KMAX, Cin, Cout)


def _phase_split_for_conv(x_nlc, lout, stride):
    """Zero-pad for the KMAX-tap window and deinterleave into `stride` phases so every tap
    read inside the kernel is a contiguous shifted window: phase[r][m] = x_pad[m*stride + r]."""
    n, l, cin = x_nlc.shape
    lph = max(lout + (KMAX - 1) // stride, -(-(l + KMAX // 2) // stride))
    total = lph * stride
    right = total - l - KMAX // 2
    assert right >= 0
    xp = jnp.pad(x_nlc, ((0, 0), (KMAX // 2, right), (0, 0)))
    if stride == 1:
        return xp[:, None, :, :]
    return xp.reshape(n, lph, stride, cin).transpose(0, 2, 1, 3)  # (N, stride, Lph, Cin)


# ---------------------------- SE / maxpool / final fuse ----------------------------

def se_alpha(gap, w1, w2):
    """gap: (N, C) f32; w1: (C//r, C), w2: (C, C//r) (PyTorch nn.Linear layout)."""
    n, c = gap.shape
    return pl.pallas_call(
        _se_kernel,
        out_shape=jax.ShapeDtypeStruct((n, c), jnp.float32),
    )(gap, w1.T.astype(jnp.float32), w2.T.astype(jnp.float32))


def maxpool1d_ceil(x_nlc, k):
    """MaxPool1d(kernel=k, stride=k, ceil_mode=True) over the L axis of (N, L, C)."""
    if k == 1:
        return x_nlc
    n, l, c = x_nlc.shape
    lout = -(-l // k)
    pad = lout * k - l
    if pad:
        x_nlc = jnp.pad(x_nlc, ((0, 0), (0, pad), (0, 0)), constant_values=-jnp.inf)
    x_ph = x_nlc.reshape(n, lout, k, c).transpose(0, 2, 1, 3)   # (N, k, Lout, C) lane-dense C
    return pl.pallas_call(
        functools.partial(_maxpool_kernel, k=k),
        out_shape=jax.ShapeDtypeStruct((n, lout, c), x_nlc.dtype),
        grid_spec=pltpu.PrefetchScalarGridSpec(
            num_scalar_prefetch=0,
            grid=(n,),
            in_specs=[pl.BlockSpec((None, k, lout, c), lambda b: (b, 0, 0, 0))],
            out_specs=pl.BlockSpec((None, lout, c), lambda b: (b, 0, 0)),
        ),
        compiler_params=pltpu.CompilerParams(dimension_semantics=("parallel",)),
    )(x_ph)


def scale_add_relu(h, alpha, sc):
    """out = relu(h * alpha + sc); h/sc (N, Lout, C) bf16, alpha (N, 1, C) f32."""
    n, lout, c = h.shape
    tl = _pick_tile(lout, (1024, 512, 256, 128))
    return pl.pallas_call(
        _scale_add_relu_kernel,
        out_shape=jax.ShapeDtypeStruct((n, lout, c), jnp.float32),
        grid_spec=pltpu.PrefetchScalarGridSpec(
            num_scalar_prefetch=0,
            grid=(n, lout // tl),
            in_specs=[
                pl.BlockSpec((None, tl, c), lambda b, li: (b, li, 0)),
                pl.BlockSpec((None, 1, c), lambda b, li: (b, 0, 0)),
                pl.BlockSpec((None, tl, c), lambda b, li: (b, li, 0)),
            ],
            out_specs=pl.BlockSpec((None, tl, c), lambda b, li: (b, li, 0)),
        ),
        compiler_params=pltpu.CompilerParams(
            dimension_semantics=("parallel", "parallel")),
    )(h, alpha, sc)


# ---------------------------- BasicBlock1D forward ----------------------------

def basic_block1d(x, params, in_channels, out_channels, stride):
    """x: (N, Cin, L) -> (N, Cout, Lout), matching the PyTorch module in eval mode."""
    n, cin, l = x.shape
    lout = (l - 1) // stride + 1

    x_nlc = jnp.transpose(x, (0, 2, 1)).astype(jnp.bfloat16)                # (N, L, Cin)

    # operation = BranchConv -> BN+ReLU -> Dropout(eval=id) -> BranchConv -> BN -> SE
    # TODO(synk): nn.Dropout is identity in eval mode; training-mode RNG dropout not implemented.
    scale1, shift1 = _bn_fold(params["bn1"])
    w1 = _fused_branch_weight(params["branch1_w"], scale1)
    x_ph = _phase_split_for_conv(x_nlc, lout, stride)
    h1_pad, _ = fused_conv_bn(x_ph, w1, shift1, lout=lout, relu=True,
                              out_pad=(KMAX // 2, KMAX // 2))               # pre-padded for conv2

    scale2, shift2 = _bn_fold(params["bn2"])
    w2 = _fused_branch_weight(params["branch2_w"], scale2)
    h2, gap = fused_conv_bn(h1_pad[:, None], w2, shift2, lout=lout, relu=False)

    alpha = se_alpha(gap[:, 0, :], params["se_w1"], params["se_w2"])        # (N, C)

    # shortcut
    sc = x_nlc
    if stride != 1:
        sc = maxpool1d_ceil(sc, stride)
    if in_channels != out_channels:
        sscale, sshift = _bn_fold(params["short_bn"], conv_bias=params["short_b"])
        ws = (jnp.transpose(params["short_w"], (2, 1, 0))
              * sscale[None, None, :]).astype(jnp.bfloat16)                 # (1, Cin, Cout)
        sc, _ = fused_conv_bn(sc[:, None], ws, sshift, lout=lout, relu=False)

    out = scale_add_relu(h2, alpha[:, None, :], sc)                         # (N, Lout, Cout) f32
    # TODO(synk): the final NLC->NCL relayout could be folded into the last kernel
    # (per-tile XLU transpose with a (C, tL) out block); kept as one XLA transpose.
    return jnp.transpose(out, (0, 2, 1))


# ---------------------------- pure-JAX reference (for self-check) ----------------------------

def ref_basic_block1d(x, params, in_channels, out_channels, stride, eps=1e-5):
    def conv(x, w, s, p, b=None):
        o = jax.lax.conv_general_dilated(x, w, (s,), [(p, p)],
                                         dimension_numbers=("NCH", "OIH", "NCH"))
        return o if b is None else o + b[None, :, None]

    def bn(x, bnp):
        g, be, m, v = bnp
        return (x - m[None, :, None]) / jnp.sqrt(v[None, :, None] + eps) * g[None, :, None] \
            + be[None, :, None]

    def branch(x, ws, s):
        return jnp.concatenate([conv(x, w, s, p) for w, p in zip(ws, PS)], axis=1)

    h = jax.nn.relu(bn(branch(x, params["branch1_w"], stride), params["bn1"]))
    h = bn(branch(h, params["branch2_w"], 1), params["bn2"])
    gap = jnp.mean(h, axis=-1)
    a = jax.nn.sigmoid(jnp.maximum(gap @ params["se_w1"].T, 0.0) @ params["se_w2"].T)
    h = h * a[:, :, None]

    sc = x
    if stride != 1:
        n, c, l = sc.shape
        lo = -(-l // stride)
        sc = jnp.pad(sc, ((0, 0), (0, 0), (0, lo * stride - l)), constant_values=-jnp.inf)
        sc = sc.reshape(n, c, lo, stride).max(axis=-1)
    if in_channels != out_channels:
        sc = bn(conv(sc, params["short_w"], 1, 0, params["short_b"]), params["short_bn"])
    return jax.nn.relu(h + sc)


# ---------------------------- deterministic parameter init ----------------------------

def init_params(key, in_ch, out_ch, reduction=16):
    c4 = out_ch // 4
    cr = max(out_ch // reduction, 1)
    keys = jax.random.split(key, 15)

    def w(k, shape, fan_in):
        return jax.random.normal(k, shape, jnp.float32) / jnp.sqrt(float(fan_in))

    def bn(k):
        kg, kb, km, kv = jax.random.split(k, 4)
        return (1.0 + 0.1 * jax.random.normal(kg, (out_ch,), jnp.float32),
                0.1 * jax.random.normal(kb, (out_ch,), jnp.float32),
                0.05 * jax.random.normal(km, (out_ch,), jnp.float32),
                1.0 + 0.1 * jax.random.uniform(kv, (out_ch,), jnp.float32))

    return {
        "branch1_w": [w(keys[i], (c4, in_ch, KS[i]), in_ch * KS[i]) for i in range(4)],
        "branch2_w": [w(keys[4 + i], (c4, out_ch, KS[i]), out_ch * KS[i]) for i in range(4)],
        "bn1": bn(keys[8]),
        "bn2": bn(keys[9]),
        "se_w1": w(keys[10], (cr, out_ch), out_ch),
        "se_w2": w(keys[11], (out_ch, cr), cr),
        "short_w": w(keys[12], (out_ch, in_ch, 1), in_ch),
        "short_b": 0.1 * jax.random.normal(keys[13], (out_ch,), jnp.float32),
        "short_bn": bn(keys[14]),
    }


if __name__ == "__main__":
    N, IN_CH, OUT_CH, L = 2, 4, 32, 16
    key = jax.random.PRNGKey(0)
    kx, kp = jax.random.split(key)
    x = jax.random.normal(kx, (N, IN_CH, L), jnp.float32)
    params = init_params(kp, IN_CH, OUT_CH)

    for stride in (2, 1):   # strided (maxpool shortcut) and non-strided paths
        fwd = jax.jit(functools.partial(
            basic_block1d, in_channels=IN_CH, out_channels=OUT_CH, stride=stride))
        out = fwd(x, params)
        jax.block_until_ready(out)

        expected_len = (L - 1) // stride + 1
        assert out.shape == (N, OUT_CH, expected_len), out.shape
        assert bool(jnp.all(jnp.isfinite(out)))

        # numerical self-check against a pure-JAX reference (loose tol: bf16 activations/MXU)
        ref = ref_basic_block1d(x, params, IN_CH, OUT_CH, stride)
        max_err = float(jnp.max(jnp.abs(out - ref)))
        assert max_err < 0.1 * (1.0 + float(jnp.max(jnp.abs(ref)))), max_err

    print("KERNEL_OK")
</pallas_src>

<mosaic_0001>
module attributes {stable_mosaic.version = 11 : i64} {
  func.func @_conv_kernel(%arg0: i32, %arg1: i32, %arg2: i32, %arg3: memref<1x2x12x4xbf16, #tpu.memory_space<vmem>>, %arg4: memref<9x4x32xbf16, #tpu.memory_space<vmem>>, %arg5: memref<1x32xf32, #tpu.memory_space<vmem>>, %arg6: memref<1x16x32xbf16, #tpu.memory_space<vmem>>, %arg7: memref<1x1x32xf32, #tpu.memory_space<vmem>>, %arg8: memref<8x32xf32, #tpu.memory_space<vmem>>) attributes {dimension_semantics = [#tpu.dimension_semantics<parallel>, #tpu.dimension_semantics<parallel>, #tpu.dimension_semantics<arbitrary>], iteration_bounds = array<i64: 2, 1, 1>, scalar_prefetch = 0 : i64, scratch_operands = 1 : i64, tpu.core_type = #tpu.core_type<tc>, window_params = [{transform_indices = @transform_0, window_bounds = array<i64: 1, 2, 12, 4>}, {transform_indices = @transform_1, window_bounds = array<i64: 9, 4, 32>}, {transform_indices = @transform_2, window_bounds = array<i64: 1, 32>}, {transform_indices = @transform_3, window_bounds = array<i64: 1, 16, 32>}, {transform_indices = @transform_4, window_bounds = array<i64: 1, 1, 32>}]} {
    %c0_i32 = arith.constant 0 : i32
    %0 = arith.cmpi eq, %arg2, %c0_i32 : i32
    %1 = arith.extui %0 : i1 to i32
    %c0_i32_0 = arith.constant 0 : i32
    %2 = arith.cmpi ne, %1, %c0_i32_0 : i32
    scf.if %2 {
      %cst_69 = arith.constant 0.000000e+00 : f32
      %62 = vector.broadcast %cst_69 : f32 to vector<8x32xf32>
      %c0_70 = arith.constant 0 : index
      %c0_71 = arith.constant 0 : index
      %63 = vector.load %arg8[%c0_70, %c0_71] : memref<8x32xf32, #tpu.memory_space<vmem>>, vector<8x32xf32>
      tpu.vector_store %arg8[%c0_70, %c0_71], %62 {strides = array<i32>} : memref<8x32xf32, #tpu.memory_space<vmem>>, vector<8x32xf32>,
    } else {
    }
    %c0 = arith.constant 0 : index
    %c0_1 = arith.constant 0 : index
    %c0_2 = arith.constant 0 : index
    %c0_3 = arith.constant 0 : index
    %3 = vector.load %arg3[%c0, %c0_1, %c0_2, %c0_3] : memref<1x2x12x4xbf16, #tpu.memory_space<vmem>>, vector<1x1x8x4xbf16>
    %4 = vector.shape_cast %3 : vector<1x1x8x4xbf16> to vector<8x4xbf16>
    %c0_4 = arith.constant 0 : index
    %c0_5 = arith.constant 0 : index
    %c0_6 = arith.constant 0 : index
    %5 = vector.load %arg4[%c0_4, %c0_5, %c0_6] : memref<9x4x32xbf16, #tpu.memory_space<vmem>>, vector<1x4x32xbf16>
    %6 = vector.shape_cast %5 : vector<1x4x32xbf16> to vector<4x32xbf16>
    %cst = arith.constant dense<0.000000e+00> : vector<8x32xf32>
    %7 = tpu.matmul %4, %6, %cst {dimension_numbers = #tpu.dot_dimension_numbers<[1], [0], [0], [1], [0, 0, 1, 1], [], []>} : vector<8x4xbf16>, vector<4x32xbf16>, vector<8x32xf32> -> vector<8x32xf32>
    %c0_7 = arith.constant 0 : index
    %c1 = arith.constant 1 : index
    %c0_8 = arith.constant 0 : index
    %c0_9 = arith.constant 0 : index
    %8 = vector.load %arg3[%c0_7, %c1, %c0_8, %c0_9] : memref<1x2x12x4xbf16, #tpu.memory_space<vmem>>, vector<1x1x8x4xbf16>
    %9 = vector.shape_cast %8 : vector<1x1x8x4xbf16> to vector<8x4xbf16>
    %c1_10 = arith.constant 1 : index
    %c0_11 = arith.constant 0 : index
    %c0_12 = arith.constant 0 : index
    %10 = vector.load %arg4[%c1_10, %c0_11, %c0_12] : memref<9x4x32xbf16, #tpu.memory_space<vmem>>, vector<1x4x32xbf16>
    %11 = vector.shape_cast %10 : vector<1x4x32xbf16> to vector<4x32xbf16>
    %cst_13 = arith.constant dense<0.000000e+00> : vector<8x32xf32>
    %12 = tpu.matmul %9, %11, %cst_13 {dimension_numbers = #tpu.dot_dimension_numbers<[1], [0], [0], [1], [0, 0, 1, 1], [], []>} : vector<8x4xbf16>, vector<4x32xbf16>, vector<8x32xf32> -> vector<8x32xf32>
    %13 = arith.addf %7, %12 : vector<8x32xf32>
    %c0_14 = arith.constant 0 : index
    %c0_15 = arith.constant 0 : index
    %c1_16 = arith.constant 1 : index
    %c0_17 = arith.constant 0 : index
    %14 = vector.load %arg3[%c0_14, %c0_15, %c1_16, %c0_17] : memref<1x2x12x4xbf16, #tpu.memory_space<vmem>>, vector<1x1x8x4xbf16>
    %15 = vector.shape_cast %14 : vector<1x1x8x4xbf16> to vector<8x4xbf16>
    %c2 = arith.constant 2 : index
    %c0_18 = arith.constant 0 : index
    %c0_19 = arith.constant 0 : index
    %16 = vector.load %arg4[%c2, %c0_18, %c0_19] : memref<9x4x32xbf16, #tpu.memory_space<vmem>>, vector<1x4x32xbf16>
    %17 = vector.shape_cast %16 : vector<1x4x32xbf16> to vector<4x32xbf16>
    %cst_20 = arith.constant dense<0.000000e+00> : vector<8x32xf32>
    %18 = tpu.matmul %15, %17, %cst_20 {dimension_numbers = #tpu.dot_dimension_numbers<[1], [0], [0], [1], [0, 0, 1, 1], [], []>} : vector<8x4xbf16>, vector<4x32xbf16>, vector<8x32xf32> -> vector<8x32xf32>
    %19 = arith.addf %13, %18 : vector<8x32xf32>
    %c0_21 = arith.constant 0 : index
    %c1_22 = arith.constant 1 : index
    %c1_23 = arith.constant 1 : index
    %c0_24 = arith.constant 0 : index
    %20 = vector.load %arg3[%c0_21, %c1_22, %c1_23, %c0_24] : memref<1x2x12x4xbf16, #tpu.memory_space<vmem>>, vector<1x1x8x4xbf16>
    %21 = vector.shape_cast %20 : vector<1x1x8x4xbf16> to vector<8x4xbf16>
    %c3 = arith.constant 3 : index
    %c0_25 = arith.constant 0 : index
    %c0_26 = arith.constant 0 : index
    %22 = vector.load %arg4[%c3, %c0_25, %c0_26] : memref<9x4x32xbf16, #tpu.memory_space<vmem>>, vector<1x4x32xbf16>
    %23 = vector.shape_cast %22 : vector<1x4x32xbf16> to vector<4x32xbf16>
    %cst_27 = arith.constant dense<0.000000e+00> : vector<8x32xf32>
    %24 = tpu.matmul %21, %23, %cst_27 {dimension_numbers = #tpu.dot_dimension_numbers<[1], [0], [0], [1], [0, 0, 1, 1], [], []>} : vector<8x4xbf16>, vector<4x32xbf16>, vector<8x32xf32> -> vector<8x32xf32>
    %25 = arith.addf %19, %24 : vector<8x32xf32>
    %c0_28 = arith.constant 0 : index
    %c0_29 = arith.constant 0 : index
    %c2_30 = arith.constant 2 : index
    %c0_31 = arith.constant 0 : index
    %26 = vector.load %arg3[%c0_28, %c0_29, %c2_30, %c0_31] : memref<1x2x12x4xbf16, #tpu.memory_space<vmem>>, vector<1x1x8x4xbf16>
    %27 = vector.shape_cast %26 : vector<1x1x8x4xbf16> to vector<8x4xbf16>
    %c4 = arith.constant 4 : index
    %c0_32 = arith.constant 0 : index
    %c0_33 = arith.constant 0 : index
    %28 = vector.load %arg4[%c4, %c0_32, %c0_33] : memref<9x4x32xbf16, #tpu.memory_space<vmem>>, vector<1x4x32xbf16>
    %29 = vector.shape_cast %28 : vector<1x4x32xbf16> to vector<4x32xbf16>
    %cst_34 = arith.constant dense<0.000000e+00> : vector<8x32xf32>
    %30 = tpu.matmul %27, %29, %cst_34 {dimension_numbers = #tpu.dot_dimension_numbers<[1], [0], [0], [1], [0, 0, 1, 1], [], []>} : vector<8x4xbf16>, vector<4x32xbf16>, vector<8x32xf32> -> vector<8x32xf32>
    %31 = arith.addf %25, %30 : vector<8x32xf32>
    %c0_35 = arith.constant 0 : index
    %c1_36 = arith.constant 1 : index
    %c2_37 = arith.constant 2 : index
    %c0_38 = arith.constant 0 : index
    %32 = vector.load %arg3[%c0_35, %c1_36, %c2_37, %c0_38] : memref<1x2x12x4xbf16, #tpu.memory_space<vmem>>, vector<1x1x8x4xbf16>
    %33 = vector.shape_cast %32 : vector<1x1x8x4xbf16> to vector<8x4xbf16>
    %c5 = arith.constant 5 : index
    %c0_39 = arith.constant 0 : index
    %c0_40 = arith.constant 0 : index
    %34 = vector.load %arg4[%c5, %c0_39, %c0_40] : memref<9x4x32xbf16, #tpu.memory_space<vmem>>, vector<1x4x32xbf16>
    %35 = vector.shape_cast %34 : vector<1x4x32xbf16> to vector<4x32xbf16>
    %cst_41 = arith.constant dense<0.000000e+00> : vector<8x32xf32>
    %36 = tpu.matmul %33, %35, %cst_41 {dimension_numbers = #tpu.dot_dimension_numbers<[1], [0], [0], [1], [0, 0, 1, 1], [], []>} : vector<8x4xbf16>, vector<4x32xbf16>, vector<8x32xf32> -> vector<8x32xf32>
    %37 = arith.addf %31, %36 : vector<8x32xf32>
    %c0_42 = arith.constant 0 : index
    %c0_43 = arith.constant 0 : index
    %c3_44 = arith.constant 3 : index
    %c0_45 = arith.constant 0 : index
    %38 = vector.load %arg3[%c0_42, %c0_43, %c3_44, %c0_45] : memref<1x2x12x4xbf16, #tpu.memory_space<vmem>>, vector<1x1x8x4xbf16>
    %39 = vector.shape_cast %38 : vector<1x1x8x4xbf16> to vector<8x4xbf16>
    %c6 = arith.constant 6 : index
    %c0_46 = arith.constant 0 : index
    %c0_47 = arith.constant 0 : index
    %40 = vector.load %arg4[%c6, %c0_46, %c0_47] : memref<9x4x32xbf16, #tpu.memory_space<vmem>>, vector<1x4x32xbf16>
    %41 = vector.shape_cast %40 : vector<1x4x32xbf16> to vector<4x32xbf16>
    %cst_48 = arith.constant dense<0.000000e+00> : vector<8x32xf32>
    %42 = tpu.matmul %39, %41, %cst_48 {dimension_numbers = #tpu.dot_dimension_numbers<[1], [0], [0], [1], [0, 0, 1, 1], [], []>} : vector<8x4xbf16>, vector<4x32xbf16>, vector<8x32xf32> -> vector<8x32xf32>
    %43 = arith.addf %37, %42 : vector<8x32xf32>
    %c0_49 = arith.constant 0 : index
    %c1_50 = arith.constant 1 : index
    %c3_51 = arith.constant 3 : index
    %c0_52 = arith.constant 0 : index
    %44 = vector.load %arg3[%c0_49, %c1_50, %c3_51, %c0_52] : memref<1x2x12x4xbf16, #tpu.memory_space<vmem>>, vector<1x1x8x4xbf16>
    %45 = vector.shape_cast %44 : vector<1x1x8x4xbf16> to vector<8x4xbf16>
    %c7 = arith.constant 7 : index
    %c0_53 = arith.constant 0 : index
    %c0_54 = arith.constant 0 : index
    %46 = vector.load %arg4[%c7, %c0_53, %c0_54] : memref<9x4x32xbf16, #tpu.memory_space<vmem>>, vector<1x4x32xbf16>
    %47 = vector.shape_cast %46 : vector<1x4x32xbf16> to vector<4x32xbf16>
    %cst_55 = arith.constant dense<0.000000e+00> : vector<8x32xf32>
    %48 = tpu.matmul %45, %47, %cst_55 {dimension_numbers = #tpu.dot_dimension_numbers<[1], [0], [0], [1], [0, 0, 1, 1], [], []>} : vector<8x4xbf16>, vector<4x32xbf16>, vector<8x32xf32> -> vector<8x32xf32>
    %49 = arith.addf %43, %48 : vector<8x32xf32>
    %c0_56 = arith.constant 0 : index
    %c0_57 = arith.constant 0 : index
    %c4_58 = arith.constant 4 : index
    %c0_59 = arith.constant 0 : index
    %50 = vector.load %arg3[%c0_56, %c0_57, %c4_58, %c0_59] : memref<1x2x12x4xbf16, #tpu.memory_space<vmem>>, vector<1x1x8x4xbf16>
    %51 = vector.shape_cast %50 : vector<1x1x8x4xbf16> to vector<8x4xbf16>
    %c8 = arith.constant 8 : index
    %c0_60 = arith.constant 0 : index
    %c0_61 = arith.constant 0 : index
    %52 = vector.load %arg4[%c8, %c0_60, %c0_61] : memref<9x4x32xbf16, #tpu.memory_space<vmem>>, vector<1x4x32xbf16>
    %53 = vector.shape_cast %52 : vector<1x4x32xbf16> to vector<4x32xbf16>
    %cst_62 = arith.constant dense<0.000000e+00> : vector<8x32xf32>
    %54 = tpu.matmul %51, %53, %cst_62 {dimension_numbers = #tpu.dot_dimension_numbers<[1], [0], [0], [1], [0, 0, 1, 1], [], []>} : vector<8x4xbf16>, vector<4x32xbf16>, vector<8x32xf32> -> vector<8x32xf32>
    %55 = arith.addf %49, %54 : vector<8x32xf32>
    %c0_63 = arith.constant 0 : index
    %c0_64 = arith.constant 0 : index
    %56 = vector.load %arg8[%c0_63, %c0_64] : memref<8x32xf32, #tpu.memory_space<vmem>>, vector<8x32xf32>
    %57 = arith.addf %56, %55 : vector<8x32xf32>
    %c0_65 = arith.constant 0 : index
    %c0_66 = arith.constant 0 : index
    %58 = vector.load %arg8[%c0_65, %c0_66] : memref<8x32xf32, #tpu.memory_space<vmem>>, vector<8x32xf32>
    tpu.vector_store %arg8[%c0_65, %c0_66], %57 {strides = array<i32>} : memref<8x32xf32, #tpu.memory_space<vmem>>, vector<8x32xf32>,
    %c0_i32_67 = arith.constant 0 : i32
    %59 = arith.cmpi eq, %arg2, %c0_i32_67 : i32
    %60 = arith.extui %59 : i1 to i32
    %c0_i32_68 = arith.constant 0 : i32
    %61 = arith.cmpi ne, %60, %c0_i32_68 : i32
    scf.if %61 {
      %c0_69 = arith.constant 0 : index
      %c0_70 = arith.constant 0 : index
      %62 = vector.load %arg8[%c0_69, %c0_70] : memref<8x32xf32, #tpu.memory_space<vmem>>, vector<8x32xf32>
      %c0_71 = arith.constant 0 : index
      %c0_72 = arith.constant 0 : index
      %63 = vector.load %arg5[%c0_71, %c0_72] : memref<1x32xf32, #tpu.memory_space<vmem>>, vector<1x32xf32>
      %64 = vector.broadcast %63 : vector<1x32xf32> to vector<8x32xf32>
      %65 = arith.addf %62, %64 : vector<8x32xf32>
      %cst_73 = arith.constant dense<0.000000e+00> : vector<32xf32>
      %66 = vector.multi_reduction <add>, %65, %cst_73 [0] : vector<8x32xf32> to vector<32xf32>
      %67 = vector.shape_cast %66 : vector<32xf32> to vector<1x32xf32>
      %cst_74 = arith.constant 8.000000e+00 : f32
      %68 = vector.broadcast %cst_74 : f32 to vector<1x32xf32>
      %69 = arith.divf %67, %68 : vector<1x32xf32>
      %c0_75 = arith.constant 0 : index
      %c0_76 = arith.constant 0 : index
      %c0_77 = arith.constant 0 : index
      %70 = vector.load %arg7[%c0_75, %c0_76, %c0_77] : memref<1x1x32xf32, #tpu.memory_space<vmem>>, vector<1x1x32xf32>
      %71 = vector.shape_cast %70 : vector<1x1x32xf32> to vector<1x32xf32>
      %72 = vector.shape_cast %69 : vector<1x32xf32> to vector<1x1x32xf32>
      tpu.vector_store %arg7[%c0_75, %c0_76, %c0_77], %72 {strides = array<i32>} : memref<1x1x32xf32, #tpu.memory_space<vmem>>, vector<1x1x32xf32>,
      %cst_78 = arith.constant 0.000000e+00 : f32
      %73 = vector.broadcast %cst_78 : f32 to vector<8x32xf32>
      %74 = arith.maximumf %65, %73 : vector<8x32xf32>
      %75 = arith.truncf %74 : vector<8x32xf32> to vector<8x32xbf16>
      %cst_79 = arith.constant 0.000000e+00 : bf16
      %76 = vector.broadcast %cst_79 : bf16 to vector<16x32xbf16>
      %c0_80 = arith.constant 0 : index
      %c0_81 = arith.constant 0 : index
      %c0_82 = arith.constant 0 : index
      %77 = vector.load %arg6[%c0_80, %c0_81, %c0_82] : memref<1x16x32xbf16, #tpu.memory_space<vmem>>, vector<1x16x32xbf16>
      %78 = vector.shape_cast %77 : vector<1x16x32xbf16> to vector<16x32xbf16>
      %79 = vector.shape_cast %76 : vector<16x32xbf16> to vector<1x16x32xbf16>
      tpu.vector_store %arg6[%c0_80, %c0_81, %c0_82], %79 {strides = array<i32>} : memref<1x16x32xbf16, #tpu.memory_space<vmem>>, vector<1x16x32xbf16>,
      %c0_83 = arith.constant 0 : index
      %c4_84 = arith.constant 4 : index
      %c0_85 = arith.constant 0 : index
      %80 = vector.load %arg6[%c0_83, %c4_84, %c0_85] : memref<1x16x32xbf16, #tpu.memory_space<vmem>>, vector<1x8x32xbf16>
      %81 = vector.shape_cast %80 : vector<1x8x32xbf16> to vector<8x32xbf16>
      %82 = vector.shape_cast %75 : vector<8x32xbf16> to vector<1x8x32xbf16>
      tpu.vector_store %arg6[%c0_83, %c4_84, %c0_85], %82 {strides = array<i32>} : memref<1x16x32xbf16, #tpu.memory_space<vmem>>, vector<1x8x32xbf16>,
    } else {
    }
    return
  }
  func.func @transform_0(%arg0: i32, %arg1: i32, %arg2: i32) -> (i32, i32, i32, i32) {
    %c0_i32 = arith.constant 0 : i32
    %c0_i32_0 = arith.constant 0 : i32
    %c0_i32_1 = arith.constant 0 : i32
    return %arg0, %c0_i32, %c0_i32_0, %arg2 : i32, i32, i32, i32
  }
  func.func @transform_1(%arg0: i32, %arg1: i32, %arg2: i32) -> (i32, i32, i32) {
    %c0_i32 = arith.constant 0 : i32
    %c0_i32_0 = arith.constant 0 : i32
    return %c0_i32, %arg2, %arg1 : i32, i32, i32
  }
  func.func @transform_2(%arg0: i32, %arg1: i32, %arg2: i32) -> (i32, i32) {
    %c0_i32 = arith.constant 0 : i32
    %c0_i32_0 = arith.constant 0 : i32
    return %c0_i32, %arg1 : i32, i32
  }
  func.func @transform_3(%arg0: i32, %arg1: i32, %arg2: i32) -> (i32, i32, i32) {
    %c0_i32 = arith.constant 0 : i32
    %c0_i32_0 = arith.constant 0 : i32
    return %arg0, %c0_i32, %arg1 : i32, i32, i32
  }
  func.func @transform_4(%arg0: i32, %arg1: i32, %arg2: i32) -> (i32, i32, i32) {
    %c0_i32 = arith.constant 0 : i32
    %c0_i32_0 = arith.constant 0 : i32
    return %arg0, %c0_i32, %arg1 : i32, i32, i32
  }
}

module attributes {stable_mosaic.version = 11 : i64} {
  func.func @_conv_kernel(%arg0: i32, %arg1: i32, %arg2: i32, %arg3: memref<1x1x16x32xbf16, #tpu.memory_space<vmem>>, %arg4: memref<9x32x32xbf16, #tpu.memory_space<vmem>>, %arg5: memref<1x32xf32, #tpu.memory_space<vmem>>, %arg6: memref<1x8x32xbf16, #tpu.memory_space<vmem>>, %arg7: memref<1x1x32xf32, #tpu.memory_space<vmem>>, %arg8: memref<8x32xf32, #tpu.memory_space<vmem>>) attributes {dimension_semantics = [#tpu.dimension_semantics<parallel>, #tpu.dimension_semantics<parallel>, #tpu.dimension_semantics<arbitrary>], iteration_bounds = array<i64: 2, 1, 1>, scalar_prefetch = 0 : i64, scratch_operands = 1 : i64, tpu.core_type = #tpu.core_type<tc>, window_params = [{transform_indices = @transform_0, window_bounds = array<i64: 1, 1, 16, 32>}, {transform_indices = @transform_1, window_bounds = array<i64: 9, 32, 32>}, {transform_indices = @transform_2, window_bounds = array<i64: 1, 32>}, {transform_indices = @transform_3, window_bounds = array<i64: 1, 8, 32>}, {transform_indices = @transform_4, window_bounds = array<i64: 1, 1, 32>}]} {
    %c0_i32 = arith.constant 0 : i32
    %0 = arith.cmpi eq, %arg2, %c0_i32 : i32
    %1 = arith.extui %0 : i1 to i32
    %c0_i32_0 = arith.constant 0 : i32
    %2 = arith.cmpi ne, %1, %c0_i32_0 : i32
    scf.if %2 {
      %cst_69 = arith.constant 0.000000e+00 : f32
      %62 = vector.broadcast %cst_69 : f32 to vector<8x32xf32>
      %c0_70 = arith.constant 0 : index
      %c0_71 = arith.constant 0 : index
      %63 = vector.load %arg8[%c0_70, %c0_71] : memref<8x32xf32, #tpu.memory_space<vmem>>, vector<8x32xf32>
      tpu.vector_store %arg8[%c0_70, %c0_71], %62 {strides = array<i32>} : memref<8x32xf32, #tpu.memory_space<vmem>>, vector<8x32xf32>,
    } else {
    }
    %c0 = arith.constant 0 : index
    %c0_1 = arith.constant 0 : index
    %c0_2 = arith.constant 0 : index
    %c0_3 = arith.constant 0 : index
    %3 = vector.load %arg3[%c0, %c0_1, %c0_2, %c0_3] : memref<1x1x16x32xbf16, #tpu.memory_space<vmem>>, vector<1x1x8x32xbf16>
    %4 = vector.shape_cast %3 : vector<1x1x8x32xbf16> to vector<8x32xbf16>
    %c0_4 = arith.constant 0 : index
    %c0_5 = arith.constant 0 : index
    %c0_6 = arith.constant 0 : index
    %5 = vector.load %arg4[%c0_4, %c0_5, %c0_6] : memref<9x32x32xbf16, #tpu.memory_space<vmem>>, vector<1x32x32xbf16>
    %6 = vector.shape_cast %5 : vector<1x32x32xbf16> to vector<32x32xbf16>
    %cst = arith.constant dense<0.000000e+00> : vector<8x32xf32>
    %7 = tpu.matmul %4, %6, %cst {dimension_numbers = #tpu.dot_dimension_numbers<[1], [0], [0], [1], [0, 0, 1, 1], [], []>} : vector<8x32xbf16>, vector<32x32xbf16>, vector<8x32xf32> -> vector<8x32xf32>
    %c0_7 = arith.constant 0 : index
    %c0_8 = arith.constant 0 : index
    %c1 = arith.constant 1 : index
    %c0_9 = arith.constant 0 : index
    %8 = vector.load %arg3[%c0_7, %c0_8, %c1, %c0_9] : memref<1x1x16x32xbf16, #tpu.memory_space<vmem>>, vector<1x1x8x32xbf16>
    %9 = vector.shape_cast %8 : vector<1x1x8x32xbf16> to vector<8x32xbf16>
    %c1_10 = arith.constant 1 : index
    %c0_11 = arith.constant 0 : index
    %c0_12 = arith.constant 0 : index
    %10 = vector.load %arg4[%c1_10, %c0_11, %c0_12] : memref<9x32x32xbf16, #tpu.memory_space<vmem>>, vector<1x32x32xbf16>
    %11 = vector.shape_cast %10 : vector<1x32x32xbf16> to vector<32x32xbf16>
    %cst_13 = arith.constant dense<0.000000e+00> : vector<8x32xf32>
    %12 = tpu.matmul %9, %11, %cst_13 {dimension_numbers = #tpu.dot_dimension_numbers<[1], [0], [0], [1], [0, 0, 1, 1], [], []>} : vector<8x32xbf16>, vector<32x32xbf16>, vector<8x32xf32> -> vector<8x32xf32>
    %13 = arith.addf %7, %12 : vector<8x32xf32>
    %c0_14 = arith.constant 0 : index
    %c0_15 = arith.constant 0 : index
    %c2 = arith.constant 2 : index
    %c0_16 = arith.constant 0 : index
    %14 = vector.load %arg3[%c0_14, %c0_15, %c2, %c0_16] : memref<1x1x16x32xbf16, #tpu.memory_space<vmem>>, vector<1x1x8x32xbf16>
    %15 = vector.shape_cast %14 : vector<1x1x8x32xbf16> to vector<8x32xbf16>
    %c2_17 = arith.constant 2 : index
    %c0_18 = arith.constant 0 : index
    %c0_19 = arith.constant 0 : index
    %16 = vector.load %arg4[%c2_17, %c0_18, %c0_19] : memref<9x32x32xbf16, #tpu.memory_space<vmem>>, vector<1x32x32xbf16>
    %17 = vector.shape_cast %16 : vector<1x32x32xbf16> to vector<32x32xbf16>
    %cst_20 = arith.constant dense<0.000000e+00> : vector<8x32xf32>
    %18 = tpu.matmul %15, %17, %cst_20 {dimension_numbers = #tpu.dot_dimension_numbers<[1], [0], [0], [1], [0, 0, 1, 1], [], []>} : vector<8x32xbf16>, vector<32x32xbf16>, vector<8x32xf32> -> vector<8x32xf32>
    %19 = arith.addf %13, %18 : vector<8x32xf32>
    %c0_21 = arith.constant 0 : index
    %c0_22 = arith.constant 0 : index
    %c3 = arith.constant 3 : index
    %c0_23 = arith.constant 0 : index
    %20 = vector.load %arg3[%c0_21, %c0_22, %c3, %c0_23] : memref<1x1x16x32xbf16, #tpu.memory_space<vmem>>, vector<1x1x8x32xbf16>
    %21 = vector.shape_cast %20 : vector<1x1x8x32xbf16> to vector<8x32xbf16>
    %c3_24 = arith.constant 3 : index
    %c0_25 = arith.constant 0 : index
    %c0_26 = arith.constant 0 : index
    %22 = vector.load %arg4[%c3_24, %c0_25, %c0_26] : memref<9x32x32xbf16, #tpu.memory_space<vmem>>, vector<1x32x32xbf16>
    %23 = vector.shape_cast %22 : vector<1x32x32xbf16> to vector<32x32xbf16>
    %cst_27 = arith.constant dense<0.000000e+00> : vector<8x32xf32>
    %24 = tpu.matmul %21, %23, %cst_27 {dimension_numbers = #tpu.dot_dimension_numbers<[1], [0], [0], [1], [0, 0, 1, 1], [], []>} : vector<8x32xbf16>, vector<32x32xbf16>, vector<8x32xf32> -> vector<8x32xf32>
    %25 = arith.addf %19, %24 : vector<8x32xf32>
    %c0_28 = arith.constant 0 : index
    %c0_29 = arith.constant 0 : index
    %c4 = arith.constant 4 : index
    %c0_30 = arith.constant 0 : index
    %26 = vector.load %arg3[%c0_28, %c0_29, %c4, %c0_30] : memref<1x1x16x32xbf16, #tpu.memory_space<vmem>>, vector<1x1x8x32xbf16>
    %27 = vector.shape_cast %26 : vector<1x1x8x32xbf16> to vector<8x32xbf16>
    %c4_31 = arith.constant 4 : index
    %c0_32 = arith.constant 0 : index
    %c0_33 = arith.constant 0 : index
    %28 = vector.load %arg4[%c4_31, %c0_32, %c0_33] : memref<9x32x32xbf16, #tpu.memory_space<vmem>>, vector<1x32x32xbf16>
    %29 = vector.shape_cast %28 : vector<1x32x32xbf16> to vector<32x32xbf16>
    %cst_34 = arith.constant dense<0.000000e+00> : vector<8x32xf32>
    %30 = tpu.matmul %27, %29, %cst_34 {dimension_numbers = #tpu.dot_dimension_numbers<[1], [0], [0], [1], [0, 0, 1, 1], [], []>} : vector<8x32xbf16>, vector<32x32xbf16>, vector<8x32xf32> -> vector<8x32xf32>
    %31 = arith.addf %25, %30 : vector<8x32xf32>
    %c0_35 = arith.constant 0 : index
    %c0_36 = arith.constant 0 : index
    %c5 = arith.constant 5 : index
    %c0_37 = arith.constant 0 : index
    %32 = vector.load %arg3[%c0_35, %c0_36, %c5, %c0_37] : memref<1x1x16x32xbf16, #tpu.memory_space<vmem>>, vector<1x1x8x32xbf16>
    %33 = vector.shape_cast %32 : vector<1x1x8x32xbf16> to vector<8x32xbf16>
    %c5_38 = arith.constant 5 : index
    %c0_39 = arith.constant 0 : index
    %c0_40 = arith.constant 0 : index
    %34 = vector.load %arg4[%c5_38, %c0_39, %c0_40] : memref<9x32x32xbf16, #tpu.memory_space<vmem>>, vector<1x32x32xbf16>
    %35 = vector.shape_cast %34 : vector<1x32x32xbf16> to vector<32x32xbf16>
    %cst_41 = arith.constant dense<0.000000e+00> : vector<8x32xf32>
    %36 = tpu.matmul %33, %35, %cst_41 {dimension_numbers = #tpu.dot_dimension_numbers<[1], [0], [0], [1], [0, 0, 1, 1], [], []>} : vector<8x32xbf16>, vector<32x32xbf16>, vector<8x32xf32> -> vector<8x32xf32>
    %37 = arith.addf %31, %36 : vector<8x32xf32>
    %c0_42 = arith.constant 0 : index
    %c0_43 = arith.constant 0 : index
    %c6 = arith.constant 6 : index
    %c0_44 = arith.constant 0 : index
    %38 = vector.load %arg3[%c0_42, %c0_43, %c6, %c0_44] : memref<1x1x16x32xbf16, #tpu.memory_space<vmem>>, vector<1x1x8x32xbf16>
    %39 = vector.shape_cast %38 : vector<1x1x8x32xbf16> to vector<8x32xbf16>
    %c6_45 = arith.constant 6 : index
    %c0_46 = arith.constant 0 : index
    %c0_47 = arith.constant 0 : index
    %40 = vector.load %arg4[%c6_45, %c0_46, %c0_47] : memref<9x32x32xbf16, #tpu.memory_space<vmem>>, vector<1x32x32xbf16>
    %41 = vector.shape_cast %40 : vector<1x32x32xbf16> to vector<32x32xbf16>
    %cst_48 = arith.constant dense<0.000000e+00> : vector<8x32xf32>
    %42 = tpu.matmul %39, %41, %cst_48 {dimension_numbers = #tpu.dot_dimension_numbers<[1], [0], [0], [1], [0, 0, 1, 1], [], []>} : vector<8x32xbf16>, vector<32x32xbf16>, vector<8x32xf32> -> vector<8x32xf32>
    %43 = arith.addf %37, %42 : vector<8x32xf32>
    %c0_49 = arith.constant 0 : index
    %c0_50 = arith.constant 0 : index
    %c7 = arith.constant 7 : index
    %c0_51 = arith.constant 0 : index
    %44 = vector.load %arg3[%c0_49, %c0_50, %c7, %c0_51] : memref<1x1x16x32xbf16, #tpu.memory_space<vmem>>, vector<1x1x8x32xbf16>
    %45 = vector.shape_cast %44 : vector<1x1x8x32xbf16> to vector<8x32xbf16>
    %c7_52 = arith.constant 7 : index
    %c0_53 = arith.constant 0 : index
    %c0_54 = arith.constant 0 : index
    %46 = vector.load %arg4[%c7_52, %c0_53, %c0_54] : memref<9x32x32xbf16, #tpu.memory_space<vmem>>, vector<1x32x32xbf16>
    %47 = vector.shape_cast %46 : vector<1x32x32xbf16> to vector<32x32xbf16>
    %cst_55 = arith.constant dense<0.000000e+00> : vector<8x32xf32>
    %48 = tpu.matmul %45, %47, %cst_55 {dimension_numbers = #tpu.dot_dimension_numbers<[1], [0], [0], [1], [0, 0, 1, 1], [], []>} : vector<8x32xbf16>, vector<32x32xbf16>, vector<8x32xf32> -> vector<8x32xf32>
    %49 = arith.addf %43, %48 : vector<8x32xf32>
    %c0_56 = arith.constant 0 : index
    %c0_57 = arith.constant 0 : index
    %c8 = arith.constant 8 : index
    %c0_58 = arith.constant 0 : index
    %50 = vector.load %arg3[%c0_56, %c0_57, %c8, %c0_58] : memref<1x1x16x32xbf16, #tpu.memory_space<vmem>>, vector<1x1x8x32xbf16>
    %51 = vector.shape_cast %50 : vector<1x1x8x32xbf16> to vector<8x32xbf16>
    %c8_59 = arith.constant 8 : index
    %c0_60 = arith.constant 0 : index
    %c0_61 = arith.constant 0 : index
    %52 = vector.load %arg4[%c8_59, %c0_60, %c0_61] : memref<9x32x32xbf16, #tpu.memory_space<vmem>>, vector<1x32x32xbf16>
    %53 = vector.shape_cast %52 : vector<1x32x32xbf16> to vector<32x32xbf16>
    %cst_62 = arith.constant dense<0.000000e+00> : vector<8x32xf32>
    %54 = tpu.matmul %51, %53, %cst_62 {dimension_numbers = #tpu.dot_dimension_numbers<[1], [0], [0], [1], [0, 0, 1, 1], [], []>} : vector<8x32xbf16>, vector<32x32xbf16>, vector<8x32xf32> -> vector<8x32xf32>
    %55 = arith.addf %49, %54 : vector<8x32xf32>
    %c0_63 = arith.constant 0 : index
    %c0_64 = arith.constant 0 : index
    %56 = vector.load %arg8[%c0_63, %c0_64] : memref<8x32xf32, #tpu.memory_space<vmem>>, vector<8x32xf32>
    %57 = arith.addf %56, %55 : vector<8x32xf32>
    %c0_65 = arith.constant 0 : index
    %c0_66 = arith.constant 0 : index
    %58 = vector.load %arg8[%c0_65, %c0_66] : memref<8x32xf32, #tpu.memory_space<vmem>>, vector<8x32xf32>
    tpu.vector_store %arg8[%c0_65, %c0_66], %57 {strides = array<i32>} : memref<8x32xf32, #tpu.memory_space<vmem>>, vector<8x32xf32>,
    %c0_i32_67 = arith.constant 0 : i32
    %59 = arith.cmpi eq, %arg2, %c0_i32_67 : i32
    %60 = arith.extui %59 : i1 to i32
    %c0_i32_68 = arith.constant 0 : i32
    %61 = arith.cmpi ne, %60, %c0_i32_68 : i32
    scf.if %61 {
      %c0_69 = arith.constant 0 : index
      %c0_70 = arith.constant 0 : index
      %62 = vector.load %arg8[%c0_69, %c0_70] : memref<8x32xf32, #tpu.memory_space<vmem>>, vector<8x32xf32>
      %c0_71 = arith.constant 0 : index
      %c0_72 = arith.constant 0 : index
      %63 = vector.load %arg5[%c0_71, %c0_72] : memref<1x32xf32, #tpu.memory_space<vmem>>, vector<1x32xf32>
      %64 = vector.broadcast %63 : vector<1x32xf32> to vector<8x32xf32>
      %65 = arith.addf %62, %64 : vector<8x32xf32>
      %cst_73 = arith.constant dense<0.000000e+00> : vector<32xf32>
      %66 = vector.multi_reduction <add>, %65, %cst_73 [0] : vector<8x32xf32> to vector<32xf32>
      %67 = vector.shape_cast %66 : vector<32xf32> to vector<1x32xf32>
      %cst_74 = arith.constant 8.000000e+00 : f32
      %68 = vector.broadcast %cst_74 : f32 to vector<1x32xf32>
      %69 = arith.divf %67, %68 : vector<1x32xf32>
      %c0_75 = arith.constant 0 : index
      %c0_76 = arith.constant 0 : index
      %c0_77 = arith.constant 0 : index
      %70 = vector.load %arg7[%c0_75, %c0_76, %c0_77] : memref<1x1x32xf32, #tpu.memory_space<vmem>>, vector<1x1x32xf32>
      %71 = vector.shape_cast %70 : vector<1x1x32xf32> to vector<1x32xf32>
      %72 = vector.shape_cast %69 : vector<1x32xf32> to vector<1x1x32xf32>
      tpu.vector_store %arg7[%c0_75, %c0_76, %c0_77], %72 {strides = array<i32>} : memref<1x1x32xf32, #tpu.memory_space<vmem>>, vector<1x1x32xf32>,
      %73 = arith.truncf %65 : vector<8x32xf32> to vector<8x32xbf16>
      %c0_78 = arith.constant 0 : index
      %c0_79 = arith.constant 0 : index
      %c0_80 = arith.constant 0 : index
      %74 = vector.load %arg6[%c0_78, %c0_79, %c0_80] : memref<1x8x32xbf16, #tpu.memory_space<vmem>>, vector<1x8x32xbf16>
      %75 = vector.shape_cast %74 : vector<1x8x32xbf16> to vector<8x32xbf16>
      %76 = vector.shape_cast %73 : vector<8x32xbf16> to vector<1x8x32xbf16>
      tpu.vector_store %arg6[%c0_78, %c0_79, %c0_80], %76 {strides = array<i32>} : memref<1x8x32xbf16, #tpu.memory_space<vmem>>, vector<1x8x32xbf16>,
    } else {
    }
    return
  }
  func.func @transform_0(%arg0: i32, %arg1: i32, %arg2: i32) -> (i32, i32, i32, i32) {
    %c0_i32 = arith.constant 0 : i32
    %c0_i32_0 = arith.constant 0 : i32
    %c0_i32_1 = arith.constant 0 : i32
    return %arg0, %c0_i32, %c0_i32_0, %arg2 : i32, i32, i32, i32
  }
  func.func @transform_1(%arg0: i32, %arg1: i32, %arg2: i32) -> (i32, i32, i32) {
    %c0_i32 = arith.constant 0 : i32
    %c0_i32_0 = arith.constant 0 : i32
    return %c0_i32, %arg2, %arg1 : i32, i32, i32
  }
  func.func @transform_2(%arg0: i32, %arg1: i32, %arg2: i32) -> (i32, i32) {
    %c0_i32 = arith.constant 0 : i32
    %c0_i32_0 = arith.constant 0 : i32
    return %c0_i32, %arg1 : i32, i32
  }
  func.func @transform_3(%arg0: i32, %arg1: i32, %arg2: i32) -> (i32, i32, i32) {
    %c0_i32 = arith.constant 0 : i32
    %c0_i32_0 = arith.constant 0 : i32
    return %arg0, %c0_i32, %arg1 : i32, i32, i32
  }
  func.func @transform_4(%arg0: i32, %arg1: i32, %arg2: i32) -> (i32, i32, i32) {
    %c0_i32 = arith.constant 0 : i32
    %c0_i32_0 = arith.constant 0 : i32
    return %arg0, %c0_i32, %arg1 : i32, i32, i32
  }
}

module attributes {stable_mosaic.version = 11 : i64} {
  func.func @_se_kernel(%arg0: memref<2x32xf32, #tpu.memory_space<vmem>>, %arg1: memref<32x2xf32, #tpu.memory_space<vmem>>, %arg2: memref<2x32xf32, #tpu.memory_space<vmem>>, %arg3: memref<2x32xf32, #tpu.memory_space<vmem>>) attributes {dimension_semantics = [], scalar_prefetch = 0 : i64, scratch_operands = 0 : i64, tpu.core_type = #tpu.core_type<tc>} {
    %c0 = arith.constant 0 : index
    %c0_0 = arith.constant 0 : index
    %0 = vector.load %arg0[%c0, %c0_0] : memref<2x32xf32, #tpu.memory_space<vmem>>, vector<2x32xf32>
    %c0_1 = arith.constant 0 : index
    %c0_2 = arith.constant 0 : index
    %1 = vector.load %arg1[%c0_1, %c0_2] : memref<32x2xf32, #tpu.memory_space<vmem>>, vector<32x2xf32>
    %cst = arith.constant dense<0.000000e+00> : vector<2x2xf32>
    %2 = tpu.matmul %0, %1, %cst {dimension_numbers = #tpu.dot_dimension_numbers<[1], [0], [0], [1], [0, 0, 1, 1], [], []>} : vector<2x32xf32>, vector<32x2xf32>, vector<2x2xf32> -> vector<2x2xf32>
    %cst_3 = arith.constant 0.000000e+00 : f32
    %3 = vector.broadcast %cst_3 : f32 to vector<2x2xf32>
    %4 = arith.maximumf %2, %3 : vector<2x2xf32>
    %c0_4 = arith.constant 0 : index
    %c0_5 = arith.constant 0 : index
    %5 = vector.load %arg2[%c0_4, %c0_5] : memref<2x32xf32, #tpu.memory_space<vmem>>, vector<2x32xf32>
    %cst_6 = arith.constant dense<0.000000e+00> : vector<2x32xf32>
    %6 = tpu.matmul %4, %5, %cst_6 {dimension_numbers = #tpu.dot_dimension_numbers<[1], [0], [0], [1], [0, 0, 1, 1], [], []>} : vector<2x2xf32>, vector<2x32xf32>, vector<2x32xf32> -> vector<2x32xf32>
    %7 = arith.negf %6 : vector<2x32xf32>
    %8 = math.exp %7 : vector<2x32xf32>
    %cst_7 = arith.constant 1.000000e+00 : f32
    %9 = vector.broadcast %cst_7 : f32 to vector<2x32xf32>
    %10 = arith.addf %9, %8 : vector<2x32xf32>
    %11 = arith.divf %9, %10 : vector<2x32xf32>
    %c0_8 = arith.constant 0 : index
    %c0_9 = arith.constant 0 : index
    %12 = vector.load %arg3[%c0_8, %c0_9] : memref<2x32xf32, #tpu.memory_space<vmem>>, vector<2x32xf32>
    tpu.vector_store %arg3[%c0_8, %c0_9], %11 {strides = array<i32>} : memref<2x32xf32, #tpu.memory_space<vmem>>, vector<2x32xf32>,
    return
  }
}

module attributes {stable_mosaic.version = 11 : i64} {
  func.func @_maxpool_kernel(%arg0: i32, %arg1: memref<1x2x8x4xbf16, #tpu.memory_space<vmem>>, %arg2: memref<1x8x4xbf16, #tpu.memory_space<vmem>>) attributes {dimension_semantics = [#tpu.dimension_semantics<parallel>], iteration_bounds = array<i64: 2>, scalar_prefetch = 0 : i64, scratch_operands = 0 : i64, tpu.core_type = #tpu.core_type<tc>, window_params = [{transform_indices = @transform_0, window_bounds = array<i64: 1, 2, 8, 4>}, {transform_indices = @transform_1, window_bounds = array<i64: 1, 8, 4>}]} {
    %c0 = arith.constant 0 : index
    %c0_0 = arith.constant 0 : index
    %c0_1 = arith.constant 0 : index
    %c0_2 = arith.constant 0 : index
    %0 = vector.load %arg1[%c0, %c0_0, %c0_1, %c0_2] : memref<1x2x8x4xbf16, #tpu.memory_space<vmem>>, vector<1x1x8x4xbf16>
    %1 = vector.shape_cast %0 : vector<1x1x8x4xbf16> to vector<8x4xbf16>
    %c0_3 = arith.constant 0 : index
    %c1 = arith.constant 1 : index
    %c0_4 = arith.constant 0 : index
    %c0_5 = arith.constant 0 : index
    %2 = vector.load %arg1[%c0_3, %c1, %c0_4, %c0_5] : memref<1x2x8x4xbf16, #tpu.memory_space<vmem>>, vector<1x1x8x4xbf16>
    %3 = vector.shape_cast %2 : vector<1x1x8x4xbf16> to vector<8x4xbf16>
    %4 = arith.maximumf %1, %3 : vector<8x4xbf16>
    %c0_6 = arith.constant 0 : index
    %c0_7 = arith.constant 0 : index
    %c0_8 = arith.constant 0 : index
    %5 = vector.load %arg2[%c0_6, %c0_7, %c0_8] : memref<1x8x4xbf16, #tpu.memory_space<vmem>>, vector<1x8x4xbf16>
    %6 = vector.shape_cast %5 : vector<1x8x4xbf16> to vector<8x4xbf16>
    %7 = vector.shape_cast %4 : vector<8x4xbf16> to vector<1x8x4xbf16>
    tpu.vector_store %arg2[%c0_6, %c0_7, %c0_8], %7 {strides = array<i32>} : memref<1x8x4xbf16, #tpu.memory_space<vmem>>, vector<1x8x4xbf16>,
    return
  }
  func.func @transform_0(%arg0: i32) -> (i32, i32, i32, i32) {
    %c0_i32 = arith.constant 0 : i32
    %c0_i32_0 = arith.constant 0 : i32
    %c0_i32_1 = arith.constant 0 : i32
    %c0_i32_2 = arith.constant 0 : i32
    return %arg0, %c0_i32, %c0_i32_0, %c0_i32_1 : i32, i32, i32, i32
  }
  func.func @transform_1(%arg0: i32) -> (i32, i32, i32) {
    %c0_i32 = arith.constant 0 : i32
    %c0_i32_0 = arith.constant 0 : i32
    %c0_i32_1 = arith.constant 0 : i32
    return %arg0, %c0_i32, %c0_i32_0 : i32, i32, i32
  }
}

module attributes {stable_mosaic.version = 11 : i64} {
  func.func @_conv_kernel(%arg0: i32, %arg1: i32, %arg2: i32, %arg3: memref<1x1x8x4xbf16, #tpu.memory_space<vmem>>, %arg4: memref<1x4x32xbf16, #tpu.memory_space<vmem>>, %arg5: memref<1x32xf32, #tpu.memory_space<vmem>>, %arg6: memref<1x8x32xbf16, #tpu.memory_space<vmem>>, %arg7: memref<1x1x32xf32, #tpu.memory_space<vmem>>, %arg8: memref<8x32xf32, #tpu.memory_space<vmem>>) attributes {dimension_semantics = [#tpu.dimension_semantics<parallel>, #tpu.dimension_semantics<parallel>, #tpu.dimension_semantics<arbitrary>], iteration_bounds = array<i64: 2, 1, 1>, scalar_prefetch = 0 : i64, scratch_operands = 1 : i64, tpu.core_type = #tpu.core_type<tc>, window_params = [{transform_indices = @transform_0, window_bounds = array<i64: 1, 1, 8, 4>}, {transform_indices = @transform_1, window_bounds = array<i64: 1, 4, 32>}, {transform_indices = @transform_2, window_bounds = array<i64: 1, 32>}, {transform_indices = @transform_3, window_bounds = array<i64: 1, 8, 32>}, {transform_indices = @transform_4, window_bounds = array<i64: 1, 1, 32>}]} {
    %c0_i32 = arith.constant 0 : i32
    %0 = arith.cmpi eq, %arg2, %c0_i32 : i32
    %1 = arith.extui %0 : i1 to i32
    %c0_i32_0 = arith.constant 0 : i32
    %2 = arith.cmpi ne, %1, %c0_i32_0 : i32
    scf.if %2 {
      %cst_13 = arith.constant 0.000000e+00 : f32
      %14 = vector.broadcast %cst_13 : f32 to vector<8x32xf32>
      %c0_14 = arith.constant 0 : index
      %c0_15 = arith.constant 0 : index
      %15 = vector.load %arg8[%c0_14, %c0_15] : memref<8x32xf32, #tpu.memory_space<vmem>>, vector<8x32xf32>
      tpu.vector_store %arg8[%c0_14, %c0_15], %14 {strides = array<i32>} : memref<8x32xf32, #tpu.memory_space<vmem>>, vector<8x32xf32>,
    } else {
    }
    %c0 = arith.constant 0 : index
    %c0_1 = arith.constant 0 : index
    %c0_2 = arith.constant 0 : index
    %c0_3 = arith.constant 0 : index
    %3 = vector.load %arg3[%c0, %c0_1, %c0_2, %c0_3] : memref<1x1x8x4xbf16, #tpu.memory_space<vmem>>, vector<1x1x8x4xbf16>
    %4 = vector.shape_cast %3 : vector<1x1x8x4xbf16> to vector<8x4xbf16>
    %c0_4 = arith.constant 0 : index
    %c0_5 = arith.constant 0 : index
    %c0_6 = arith.constant 0 : index
    %5 = vector.load %arg4[%c0_4, %c0_5, %c0_6] : memref<1x4x32xbf16, #tpu.memory_space<vmem>>, vector<1x4x32xbf16>
    %6 = vector.shape_cast %5 : vector<1x4x32xbf16> to vector<4x32xbf16>
    %cst = arith.constant dense<0.000000e+00> : vector<8x32xf32>
    %7 = tpu.matmul %4, %6, %cst {dimension_numbers = #tpu.dot_dimension_numbers<[1], [0], [0], [1], [0, 0, 1, 1], [], []>} : vector<8x4xbf16>, vector<4x32xbf16>, vector<8x32xf32> -> vector<8x32xf32>
    %c0_7 = arith.constant 0 : index
    %c0_8 = arith.constant 0 : index
    %8 = vector.load %arg8[%c0_7, %c0_8] : memref<8x32xf32, #tpu.memory_space<vmem>>, vector<8x32xf32>
    %9 = arith.addf %8, %7 : vector<8x32xf32>
    %c0_9 = arith.constant 0 : index
    %c0_10 = arith.constant 0 : index
    %10 = vector.load %arg8[%c0_9, %c0_10] : memref<8x32xf32, #tpu.memory_space<vmem>>, vector<8x32xf32>
    tpu.vector_store %arg8[%c0_9, %c0_10], %9 {strides = array<i32>} : memref<8x32xf32, #tpu.memory_space<vmem>>, vector<8x32xf32>,
    %c0_i32_11 = arith.constant 0 : i32
    %11 = arith.cmpi eq, %arg2, %c0_i32_11 : i32
    %12 = arith.extui %11 : i1 to i32
    %c0_i32_12 = arith.constant 0 : i32
    %13 = arith.cmpi ne, %12, %c0_i32_12 : i32
    scf.if %13 {
      %c0_13 = arith.constant 0 : index
      %c0_14 = arith.constant 0 : index
      %14 = vector.load %arg8[%c0_13, %c0_14] : memref<8x32xf32, #tpu.memory_space<vmem>>, vector<8x32xf32>
      %c0_15 = arith.constant 0 : index
      %c0_16 = arith.constant 0 : index
      %15 = vector.load %arg5[%c0_15, %c0_16] : memref<1x32xf32, #tpu.memory_space<vmem>>, vector<1x32xf32>
      %16 = vector.broadcast %15 : vector<1x32xf32> to vector<8x32xf32>
      %17 = arith.addf %14, %16 : vector<8x32xf32>
      %cst_17 = arith.constant dense<0.000000e+00> : vector<32xf32>
      %18 = vector.multi_reduction <add>, %17, %cst_17 [0] : vector<8x32xf32> to vector<32xf32>
      %19 = vector.shape_cast %18 : vector<32xf32> to vector<1x32xf32>
      %cst_18 = arith.constant 8.000000e+00 : f32
      %20 = vector.broadcast %cst_18 : f32 to vector<1x32xf32>
      %21 = arith.divf %19, %20 : vector<1x32xf32>
      %c0_19 = arith.constant 0 : index
      %c0_20 = arith.constant 0 : index
      %c0_21 = arith.constant 0 : index
      %22 = vector.load %arg7[%c0_19, %c0_20, %c0_21] : memref<1x1x32xf32, #tpu.memory_space<vmem>>, vector<1x1x32xf32>
      %23 = vector.shape_cast %22 : vector<1x1x32xf32> to vector<1x32xf32>
      %24 = vector.shape_cast %21 : vector<1x32xf32> to vector<1x1x32xf32>
      tpu.vector_store %arg7[%c0_19, %c0_20, %c0_21], %24 {strides = array<i32>} : memref<1x1x32xf32, #tpu.memory_space<vmem>>, vector<1x1x32xf32>,
      %25 = arith.truncf %17 : vector<8x32xf32> to vector<8x32xbf16>
      %c0_22 = arith.constant 0 : index
      %c0_23 = arith.constant 0 : index
      %c0_24 = arith.constant 0 : index
      %26 = vector.load %arg6[%c0_22, %c0_23, %c0_24] : memref<1x8x32xbf16, #tpu.memory_space<vmem>>, vector<1x8x32xbf16>
      %27 = vector.shape_cast %26 : vector<1x8x32xbf16> to vector<8x32xbf16>
      %28 = vector.shape_cast %25 : vector<8x32xbf16> to vector<1x8x32xbf16>
      tpu.vector_store %arg6[%c0_22, %c0_23, %c0_24], %28 {strides = array<i32>} : memref<1x8x32xbf16, #tpu.memory_space<vmem>>, vector<1x8x32xbf16>,
    } else {
    }
    return
  }
  func.func @transform_0(%arg0: i32, %arg1: i32, %arg2: i32) -> (i32, i32, i32, i32) {
    %c0_i32 = arith.constant 0 : i32
    %c0_i32_0 = arith.constant 0 : i32
    %c0_i32_1 = arith.constant 0 : i32
    return %arg0, %c0_i32, %c0_i32_0, %arg2 : i32, i32, i32, i32
  }
  func.func @transform_1(%arg0: i32, %arg1: i32, %arg2: i32) -> (i32, i32, i32) {
    %c0_i32 = arith.constant 0 : i32
    %c0_i32_0 = arith.constant 0 : i32
    return %c0_i32, %arg2, %arg1 : i32, i32, i32
  }
  func.func @transform_2(%arg0: i32, %arg1: i32, %arg2: i32) -> (i32, i32) {
    %c0_i32 = arith.constant 0 : i32
    %c0_i32_0 = arith.constant 0 : i32
    return %c0_i32, %arg1 : i32, i32
  }
  func.func @transform_3(%arg0: i32, %arg1: i32, %arg2: i32) -> (i32, i32, i32) {
    %c0_i32 = arith.constant 0 : i32
    %c0_i32_0 = arith.constant 0 : i32
    return %arg0, %c0_i32, %arg1 : i32, i32, i32
  }
  func.func @transform_4(%arg0: i32, %arg1: i32, %arg2: i32) -> (i32, i32, i32) {
    %c0_i32 = arith.constant 0 : i32
    %c0_i32_0 = arith.constant 0 : i32
    return %arg0, %c0_i32, %arg1 : i32, i32, i32
  }
}

module attributes {stable_mosaic.version = 11 : i64} {
  func.func @_scale_add_relu_kernel(%arg0: i32, %arg1: i32, %arg2: memref<1x8x32xbf16, #tpu.memory_space<vmem>>, %arg3: memref<1x1x32xf32, #tpu.memory_space<vmem>>, %arg4: memref<1x8x32xbf16, #tpu.memory_space<vmem>>, %arg5: memref<1x8x32xf32, #tpu.memory_space<vmem>>) attributes {dimension_semantics = [#tpu.dimension_semantics<parallel>, #tpu.dimension_semantics<parallel>], iteration_bounds = array<i64: 2, 1>, scalar_prefetch = 0 : i64, scratch_operands = 0 : i64, tpu.core_type = #tpu.core_type<tc>, window_params = [{transform_indices = @transform_0, window_bounds = array<i64: 1, 8, 32>}, {transform_indices = @transform_1, window_bounds = array<i64: 1, 1, 32>}, {transform_indices = @transform_2, window_bounds = array<i64: 1, 8, 32>}, {transform_indices = @transform_3, window_bounds = array<i64: 1, 8, 32>}]} {
    %c0 = arith.constant 0 : index
    %c0_0 = arith.constant 0 : index
    %c0_1 = arith.constant 0 : index
    %0 = vector.load %arg2[%c0, %c0_0, %c0_1] : memref<1x8x32xbf16, #tpu.memory_space<vmem>>, vector<1x8x32xbf16>
    %1 = vector.shape_cast %0 : vector<1x8x32xbf16> to vector<8x32xbf16>
    %2 = arith.extf %1 : vector<8x32xbf16> to vector<8x32xf32>
    %c0_2 = arith.constant 0 : index
    %c0_3 = arith.constant 0 : index
    %c0_4 = arith.constant 0 : index
    %3 = vector.load %arg3[%c0_2, %c0_3, %c0_4] : memref<1x1x32xf32, #tpu.memory_space<vmem>>, vector<1x1x32xf32>
    %4 = vector.shape_cast %3 : vector<1x1x32xf32> to vector<1x32xf32>
    %5 = vector.broadcast %4 : vector<1x32xf32> to vector<8x32xf32>
    %6 = arith.mulf %2, %5 : vector<8x32xf32>
    %c0_5 = arith.constant 0 : index
    %c0_6 = arith.constant 0 : index
    %c0_7 = arith.constant 0 : index
    %7 = vector.load %arg4[%c0_5, %c0_6, %c0_7] : memref<1x8x32xbf16, #tpu.memory_space<vmem>>, vector<1x8x32xbf16>
    %8 = vector.shape_cast %7 : vector<1x8x32xbf16> to vector<8x32xbf16>
    %9 = arith.extf %8 : vector<8x32xbf16> to vector<8x32xf32>
    %10 = arith.addf %6, %9 : vector<8x32xf32>
    %cst = arith.constant 0.000000e+00 : f32
    %11 = vector.broadcast %cst : f32 to vector<8x32xf32>
    %12 = arith.maximumf %10, %11 : vector<8x32xf32>
    %c0_8 = arith.constant 0 : index
    %c0_9 = arith.constant 0 : index
    %c0_10 = arith.constant 0 : index
    %13 = vector.load %arg5[%c0_8, %c0_9, %c0_10] : memref<1x8x32xf32, #tpu.memory_space<vmem>>, vector<1x8x32xf32>
    %14 = vector.shape_cast %13 : vector<1x8x32xf32> to vector<8x32xf32>
    %15 = vector.shape_cast %12 : vector<8x32xf32> to vector<1x8x32xf32>
    tpu.vector_store %arg5[%c0_8, %c0_9, %c0_10], %15 {strides = array<i32>} : memref<1x8x32xf32, #tpu.memory_space<vmem>>, vector<1x8x32xf32>,
    return
  }
  func.func @transform_0(%arg0: i32, %arg1: i32) -> (i32, i32, i32) {
    %c0_i32 = arith.constant 0 : i32
    %c0_i32_0 = arith.constant 0 : i32
    return %arg0, %arg1, %c0_i32 : i32, i32, i32
  }
  func.func @transform_1(%arg0: i32, %arg1: i32) -> (i32, i32, i32) {
    %c0_i32 = arith.constant 0 : i32
    %c0_i32_0 = arith.constant 0 : i32
    %c0_i32_1 = arith.constant 0 : i32
    return %arg0, %c0_i32, %c0_i32_0 : i32, i32, i32
  }
  func.func @transform_2(%arg0: i32, %arg1: i32) -> (i32, i32, i32) {
    %c0_i32 = arith.constant 0 : i32
    %c0_i32_0 = arith.constant 0 : i32
    return %arg0, %arg1, %c0_i32 : i32, i32, i32
  }
  func.func @transform_3(%arg0: i32, %arg1: i32) -> (i32, i32, i32) {
    %c0_i32 = arith.constant 0 : i32
    %c0_i32_0 = arith.constant 0 : i32
    return %arg0, %arg1, %c0_i32 : i32, i32, i32
  }
}

</mosaic_0001>

<bundles_post_ra>
// kernel: basic_block1d.8
= control target key start
LH: loop header
LB: loop body
LE: loop exit
PB: predicated region body
PF: predicated region fallthrough
CT: control target
= control target key end

     0   :  { %vm19_vm0 = vcmask 261120   ;;  %vm49_vm1 = vcmask 1041408   ;;  %vm45_vm2 = vcmask 15360   ;;  %vm92_vm6 = vcmask 254976   ;;  %s147_s1 = inlined_call_operand.vmem [shape: f32[32,2], index: 1, kind: input, shape index: {}]   ;;  %s148_s0 = inlined_call_operand.vmem [shape: f32[2,32], index: 0, kind: input, shape index: {}]   ;;  %s149_s2 = inlined_call_operand.vmem [shape: f32[2,32], index: 2, kind: input, shape index: {}]   ;;  %s150_s3 = inlined_call_operand.vmem [shape: f32[2,32], index: 3, kind: output, shape index: {}]  }
   0x1   :  { %v18_v0 = vld [vmem:[%s147_s1 + $0x18] sm:$0xff]  ;;  %v17_v1 = vld [vmem:[%s147_s1 + $0x10] sm:$0xff]  ;;  %v16_v2 = vld [vmem:[%s147_s1 + $0x8] sm:$0xff] }
   0x2   :  { %35 = vmatpush.msra.mxu0 %v18_v0  ;;  %v15_v3 = vld [vmem:[%s147_s1] sm:$0xff] }
   0x3   :  { %v14_v4 = vld [vmem:[%s148_s0] sm:$0x3] }
   0x4   :  { %36 = vmatpush.msra.mxu0 %v17_v1  ;;  %v44_v5 = vld [vmem:[%s149_s2] sm:$0x3] }
   0x5   :  { %99 = vmatpush.msk.msra.mxu1 %vm49_vm1, %v44_v5 }
   0x6   :  { %37 = vmatpush.msra.mxu0 %v16_v2 }
   0x8   :  { %38 = vmatpush.msra.mxu0 %v15_v3 }
   0x9   :  { %98 = vmatmul.msk.f32.vlgmr.msra.gmra.mxu0 %vm19_vm0, %v14_v4 }
  0x86   :  { %v40_v6 = vpop.f32.mrf.mxu0 }
  0x87   :  { %v43_v7 = vmax.f32 %v40_v6, 0.0 }
  0x89   :  { %100 = vmatmul.msk.f32.vlgmr.msra.gmra.mxu1 %vm45_vm2, %v43_v7 }
 0x106   :  { %v70_v8 = vpop.f32.mrf.mxu1 }
 0x107   :  { %v101_v9 = vmul.f32 -1.442695, %v70_v8 }
 0x109   :  { %102 = vpow2.f32 %v101_v9 }
 0x10f   :  { %v103_v10 = vpop.eup %102 }
 0x110   :  { %v76_v11 = vadd.f32 1.0, %v103_v10 }
 0x112   :  { %104 = vrcp.f32 %v76_v11  ;;  %v88_v15 = vand.u32 2147483648, %v76_v11  ;;  %v86_v17 = vand.u32 2147483647, %v76_v11  ;;  %vm82_vm4 = vweird.f32 %v76_v11 }
 0x114   :  { %v89_v19 = vor.u32 1.1754944e-38, %v88_v15  ;;  %vm87_vm7 = vcmp.eq.f32.partialorder %v86_v17, 8.507059e+37 }
 0x118   :  { %v105_v12 = vpop.eup %104 }
 0x119   :  { %v78_v13 = vmul.f32 %v105_v12, %v76_v11  ;;  %vm83_vm3 = vweird.f32 %v105_v12 }
 0x11a   :  { %vm84_vm5 = vmor %vm82_vm4, %vm83_vm3 }
 0x11b   :  { %v79_v14 = vsub.f32 1.0, %v78_v13 }
 0x11d   :  { %v80_v16 = vmul.f32 %v105_v12, %v79_v14 }
 0x11f   :  { %v81_v18 = vadd.f32 %v105_v12, %v80_v16 }
 0x121   :  { %v85_v20 = vsel %vm84_vm5, %v105_v12, %v81_v18 }
 0x122   :  { %v90_v21 = vsel %vm87_vm7, %v89_v19, %v85_v20 }
 0x123   :  { %93 = vst.msk [vmem:[%s150_s3] sm:$0x3] %vm92_vm6, %v90_v21 }

// kernel: basic_block1d.6
= control target key start
LH: loop header
LB: loop body
LE: loop exit
PB: predicated region body
PF: predicated region fallthrough
CT: control target
= control target key end

     0   :  { %10 = vsyncpa [#allocation4], 0  ;;  %s1152_s0 = inlined_call_operand.vmem [shape: bf16[2,2,12,4], index: 0, kind: input, shape index: {}]   ;;  %s1153_s1 = inlined_call_operand.vmem [shape: bf16[9,4,32], index: 1, kind: input, shape index: {}]   ;;  %s1154_s2 = inlined_call_operand.vmem [shape: f32[1,32], index: 2, kind: input, shape index: {}]   ;;  %s1155_s3 = inlined_call_operand.vmem [shape: bf16[2,16,32], index: 3, kind: output, shape index: {0}]   ;;  %s1156_s4 = inlined_call_operand.hbm [shape: f32[2,1,32], index: 4, kind: output, shape index: {1}]  }
   0x1   :  { %12 = vsyncpa [#allocation4 + $0x1], 0  ;;  %s978_s15 = smov 0   ;;  %s980_s16 = smov 0  }
   0x2   :  { %s982_s17 = smov 0   ;;  %s984_s18 = smov 0  }
   0x3   :  { %s986_s19 = smov 0   ;;  %s988_s20 = smov 0  }
   0x4 LB: > { %s772_s21 = sadd.s32 4294967295, %s948_s20   ;;  %s773_s22 = sadd.s32 4294967294, %s948_s20   ;;  %s948_s20 = sphi %s988_s20, %s18_s20   ;;  %s944_s19 = sphi %s986_s19, %s1163_s19   ;;  %s940_s18 = sphi %s984_s18, %s1162_s18   ;;  %s936_s17 = sphi %s982_s17, %s1161_s17   ;;  %s932_s16 = sphi %s980_s16, %s1160_s16   ;;  %s928_s15 = sphi %s978_s15, %s1159_s15  }
   0x5   : > { %s37_s23 = sadd.s32 1, %s944_s19  ;;  %s156_s24 = sadd.s32 1, %s936_s17 }
   0x6   : > { %p39_p0 = scmp.ge.s32.totalorder %s37_s23, 2  ;;  %p166_p1 = scmp.ne.s32.totalorder %s936_s17, %s932_s16 }
   0x7   : > { %p167_p2 = scmp.eq.s32.totalorder %s772_s21, 1  ;;  %p172_p3 = scmp.ne.s32.totalorder %s932_s16, %s928_s15 }
   0x8   : > { %s1165_s23 = smov (%p39_p0, %s37_s23), 0  ;;  %p173_p5 = scmp.eq.s32.totalorder %s773_s22, 1 }
   0x9   : > { %p1018_p4 = por %p167_p2, %p166_p1  ;;  %s151_s26 = ssub.s32 %s944_s19, %s1165_s23 }
   0xa   : > { %p778_p6 = scmp.ge.s32.totalorder %s948_s20, 1  ;;  %p154_p7 = scmp.eq.s32.totalorder %s151_s26, 0 }
   0xb   : > { %p1025_p8 = por %p173_p5, %p172_p3  ;;  %p218_p9 = scmp.lt.s32.totalorder %s948_s20, 3 }
   0xc   : > { %s1031_s28 = scalar_select %p154_p7, %s936_s17, %s156_s24  }
   0xd   : > { %p219_p10 = pnand %p778_p6, %p218_p9 }
   0xe   : > { %p264_p11 = scmp.lt.s32.totalorder (!%p219_p10), %s940_s18, 1  ;;  %s629_s29 = scalar_lea.hbm (!%p219_p10), %s1156_s4, %s940_s18 }
   0xf   : > { %222 = sbr.rel (%p219_p10) target bundleno = 221 (0xdd), region = 32  ;;  %s633_s6 = sshll.u32 (!%p219_p10), %s629_s29, 4  ;;  %s634_s6 = int_to_ptr.hbm [resolvable:$true] %s633_s6 }
  0x10   : > { %s884_s8 = sshra.s32 (!%p219_p10), %s634_s6, 4  ;;  %s890_s12 = scalar_lea.hbm (!%p219_p10), %s1156_s4, 2  ;;  %s885_s8 = int_to_ptr.hbm [resolvable:$true] %s884_s8 }
  0x11   : > { %s886_s10 = scalar_lea.hbm (!%p219_p10), %s885_s8, 1  ;;  %p891_p1 = scmp.lt.s32.totalorder (!%p219_p10), %s885_s8, %s1156_s4 }
  0x12   : > { %p887_p12 = scmp.ne.s32.totalorder (!%p219_p10), %s885_s8, %s886_s10  ;;  %p892_p2 = scmp.lt.s32.totalorder (!%p219_p10), %s890_s12, %s886_s10 }
  0x14   : > { %v784_v0 = vld [vmem:[%s1153_s1 + $0x2] sm:$0x3]  ;;  %vm307_vm0 = vcmask 1041408   ;;  %v298_v2 = vld [vmem:[%s1153_s1] sm:$0x3]  ;;  %s1045_s9 = scalar_select %p264_p11, %s940_s18, 1 }
  0x15   : > { %v309_v1 = vsel %vm307_vm0, %v784_v0, 0  ;;  %v793_v3 = vld [vmem:[%s1153_s1 + $0x8] sm:$0x3]  ;;  %v328_v4 = vsel %vm307_vm0, %v298_v2, 0  ;;  %v787_v6 = vld [vmem:[%s1153_s1 + $0x4] sm:$0x3]  ;;  %p888_p13 = pnand %p887_p12, %p1018_p4  ;;  %p893_p3 = por %p892_p2, %p891_p1 }
  0x16   : > { %318 = vmatpush.bf16.msra.mxu0 %v309_v1  ;;  %v426_v5 = vsel %vm307_vm0, %v793_v3, 0  ;;  %337 = vmatpush.bf16.msra.mxu1 %v328_v4  ;;  %v363_v7 = vsel %vm307_vm0, %v787_v6, 0  ;;  %v791_v8 = vld [vmem:[%s1153_s1 + $0x6] sm:$0x3]  ;;  %v798_v9 = vld [vmem:[%s1153_s1 + $0xc] sm:$0x3] }
  0x17   : > { %s807_s22 = sshll.u32 %s1045_s9, 4  ;;  %vm303_vm1 = vcmask 31744   ;;  %372 = vmatpush.bf16.msra.mxu2 %v363_v7  ;;  %v399_v10 = vsel %vm307_vm0, %v791_v8, 0  ;;  %v487_v11 = vsel %vm307_vm0, %v798_v9, 0  ;;  %v801_v12 = vld [vmem:[%s1153_s1 + $0xe] sm:$0x3]  ;;  %p889_p0 = pneg %p888_p13 }
  0x18   : > { %s1068_s5 = scalar_lea.vmem %s1152_s0, %s807_s22  ;;  %408 = vmatpush.bf16.msra.mxu3 %v399_v10  ;;  %v521_v13 = vsel %vm307_vm0, %v801_v12, 0  ;;  %v796_v14 = vld [vmem:[%s1153_s1 + $0xa] sm:$0x3]  ;;  %v803_v15 = vld [vmem:[%s1153_s1 + $0x10] sm:$0x3]  ;;  %vm295_vm2 = vcmask 261120  }
  0x19   : > { %v783_v16 = vld [vmem:[%s1068_s5 + $0x8] sm:$0xf]  ;;  %v297_v17 = vld [vmem:[%s1068_s5] sm:$0xf]  ;;  %v344_v19 = vld [vmem:[%s1068_s5 + $0x4] sm:$0x1]  ;;  %p894_p5 = pnand %p893_p3, %p889_p0 }
  0x1a   : > { %435 = vmatpush.bf16.msrb.mxu0 %v426_v5  ;;  %v343_v18 = vld [vmem:[%s1068_s5] sm:$0xf]  ;;  %786 = vmatmul.msk.bf16.vlgmr.msra.gmra.mxu1 %vm303_vm1, %v297_v17  ;;  %v789_v21 = vld [vmem:[%s1068_s5 + $0x8] sm:$0xf]  ;;  %v790_v22 = vld [vmem:[%s1068_s5 + $0xc] sm:$0x1]  ;;  %v350_v23 = vunpack.c.l.b16 %v344_v19 }
  0x1b   : > { %496 = vmatpush.bf16.msrb.mxu2 %v487_v11  ;;  %785 = vmatmul.msk.bf16.vlgmr.msra.gmra.mxu0 %vm303_vm1, %v783_v16  ;;  %v349_v20 = vunpack.c.l.b16 %v343_v18  ;;  %v385_v24 = vunpack.c.l.b16 %v789_v21  ;;  %v386_v25 = vunpack.c.l.b16 %v790_v22  ;;  %v453_v26 = vsel %vm307_vm0, %v796_v14, 0  ;;  %v415_v27 = vld [vmem:[%s1068_s5] sm:$0xe]  ;;  %v795_v28 = vld [vmem:[%s1068_s5 + $0x8] sm:$0xe]  ;;  %s808_s11 = sshll.u32 %s1045_s9, 3 }
  0x1c   : > { %530 = vmatpush.bf16.msrb.mxu3 %v521_v13  ;;  %462 = vmatpush.bf16.msrb.mxu1 %v453_v26  ;;  %v548_v29 = vsel %vm307_vm0, %v803_v15, 0  ;;  %v419_v32 = vunpack.c.l.b16 %v415_v27  ;;  %v446_v33 = vunpack.c.l.b16 %v795_v28  ;;  %v469_v34 = vld [vmem:[%s1068_s5 + $0x4] sm:$0x3]  ;;  %v800_v35 = vld [vmem:[%s1068_s5 + $0xc] sm:$0x3]  ;;  %v950_v4 = vmov 0.0   ;;  %s1104_s14 = scalar_lea.vmem %s1155_s3, %s808_s11 }
  0x1d   : > { %v351_v30 = vpack.c.b16 %v350_v23, %v349_v20  ;;  %v387_v31 = vpack.c.b16 %v386_v25, %v385_v24  ;;  %v473_v42 = vunpack.c.l.b16 %v469_v34  ;;  %v507_v43 = vunpack.c.l.b16 %v800_v35  ;;  %v537_v56 = vld [vmem:[%s1068_s5] sm:$0xc]  ;;  %296 = vst.msk [vmem:[#allocation2] sm:$0xff] %vm295_vm2, %v950_v4  ;;  %v867_v34 = vld [vmem:[%s1154_s2] ss:$0 sm:$0xff]  ;;  %s262_s22 = sand.u32 1, %s932_s16  }
  0x1e   : > { %557 = vmatpush.bf16.msra.mxu0 %v548_v29  ;;  %v420_v44 = vpack.c.b16 %v350_v23, %v419_v32  ;;  %v447_v45 = vpack.c.b16 %v386_v25, %v446_v33  ;;  %v541_v61 = vunpack.c.l.b16 %v537_v56  ;;  %vm596_vm3 = vcmask 257024   ;;  %s263_s30 = scalar_lea.vmem [#allocation3], %s262_s22  ;;  %s617_s7 = scalar_lea.sflag [#allocation4], %s262_s22 }
  0x1f   : > { %v353_v36 = vshrl.u32 %v351_v30, 16  ;;  %v355_v37 = vshll.u32 %v351_v30, 16  ;;  %v389_v38 = vshrl.u32 %v387_v31, 16  ;;  %v391_v39 = vshll.u32 %v387_v31, 16  ;;  %s631_s5 = sshll.u32 %s263_s30, 4  ;;  %s632_s5 = int_to_ptr.vmem [resolvable:$true] %s631_s5 }
  0x20   : > { %v474_v48 = vpack.c.b16 %v473_v42, %v419_v32  ;;  %v508_v49 = vpack.c.b16 %v507_v43, %v446_v33  ;;  %v421_v50 = vrot.slane %v420_v44, 1  ;;  %v448_v51 = vrot.slane %v447_v45, 1 }
  0x21   : > { %v357_v40 = vrot.slane %v355_v37, 1  ;;  %v393_v41 = vrot.slane %v391_v39, 1  ;;  %v542_v0 = vpack.c.b16 %v473_v42, %v541_v61  ;;  %v951_v13 = vmov 0  }
  0x22   : > { %v476_v52 = vshrl.u32 %v474_v48, 16  ;;  %v479_v53 = vshll.u32 %v474_v48, 16  ;;  %v510_v54 = vshrl.u32 %v508_v49, 16  ;;  %v513_v55 = vshll.u32 %v508_v49, 16  ;;  %597 = vst.msk [vmem:[%s1104_s14] sm:$0xf] %vm596_vm3, %v951_v13 }
  0x23   : > { %v358_v46 = vor.u32 %v357_v40, %v353_v36  ;;  %v394_v47 = vor.u32 %v393_v41, %v389_v38  ;;  %v543_v1 = vrot.slane %v542_v0, 2  ;;  %598 = vst.msk [vmem:[%s1104_s14 + $0x4] sm:$0xf] %vm596_vm3, %v951_v13  ;;  %v952_v27 = vmov 8.0  }
  0x24   : > { %v478_v57 = vrot.slane %v476_v52, 1  ;;  %v481_v58 = vrot.slane %v479_v53, 2  ;;  %v512_v59 = vrot.slane %v510_v54, 1  ;;  %v515_v60 = vrot.slane %v513_v55, 2  ;;  %v564_v26 = vld [vmem:[#allocation2] sm:$0xff] }
  0x25   : > { %788 = vmatmul.msk.bf16.vlgmr.msra.gmra.mxu2 %vm303_vm1, %v358_v46  ;;  %792 = vmatmul.msk.bf16.vlgmr.msra.gmra.mxu3 %vm303_vm1, %v394_v47  ;;  %868 = vrcp.f32 %v952_v27  ;;  %vm604_vm4 = vcmask 257026   ;;  %vm606_vm5 = vcmask 254976   ;;  %vm592_vm7 = vcmask 253952  }
  0x26   : > { %v482_v62 = vor.u32 %v481_v58, %v478_v57  ;;  %v516_v63 = vor.u32 %v515_v60, %v512_v59 }
  0x2a   : > { %797 = vmatmul.msk.bf16.vlgmr.msrb.gmra.mxu1 %vm303_vm1, %v448_v51 }
  0x2b   : > { %794 = vmatmul.msk.bf16.vlgmr.msrb.gmra.mxu0 %vm303_vm1, %v421_v50  ;;  %v869_v33 = vpop.eup %868 }
  0x2c   : > { %v585_v35 = vmul.f32 8.0, %v869_v33  ;;  %vm589_vm6 = vweird.f32 %v869_v33 }
  0x2e   : > { %v586_v38 = vsub.f32 1.0, %v585_v35 }
  0x30   : > { %v587_v43 = vmul.f32 %v869_v33, %v586_v38 }
  0x32   : > { %v588_v48 = vadd.f32 %v869_v33, %v587_v43 }
  0x34   : > { %v590_v51 = vsel %vm589_vm6, %v869_v33, %v588_v48 }
  0x35   : > { %799 = vmatmul.msk.bf16.vlgmr.msrb.gmra.mxu2 %vm303_vm1, %v482_v62  ;;  %802 = vmatmul.msk.bf16.vlgmr.msrb.gmra.mxu3 %vm303_vm1, %v516_v63 }
  0x3b   : > { %804 = vmatmul.msk.bf16.vlgmr.msra.gmra.mxu0 %vm303_vm1, %v543_v1 }
  0x97   : > { %v339_v3 = vpop.f32.mrf.mxu1 }
  0x98   : > { %v320_v2 = vpop.f32.mrf.mxu0 }
  0x99   : > { %v340_v11 = vadd.f32 %v339_v3, %v320_v2 }
  0x9f   : > { %v341_v6 = vpop.f32.mrf.mxu1 }
  0xa0   : > { %v322_v5 = vpop.f32.mrf.mxu0 }
  0xa7   : > { %v464_v8 = vpop.f32.mrf.mxu1 }
  0xa8   : > { %v437_v7 = vpop.f32.mrf.mxu0  ;;  %v374_v9 = vpop.f32.mrf.mxu2 }
  0xa9   : > { %v410_v10 = vpop.f32.mrf.mxu3  ;;  %v378_v12 = vadd.f32 %v374_v9, %v340_v11 }
  0xab   : > { %v414_v14 = vadd.f32 %v410_v10, %v378_v12 }
  0xad   : > { %v441_v19 = vadd.f32 %v437_v7, %v414_v14 }
  0xaf   : > { %v466_v16 = vpop.f32.mrf.mxu1  ;;  %v468_v20 = vadd.f32 %v464_v8, %v441_v19 }
  0xb0   : > { %v439_v15 = vpop.f32.mrf.mxu0  ;;  %v376_v17 = vpop.f32.mrf.mxu2 }
  0xb1   : > { %v412_v18 = vpop.f32.mrf.mxu3 }
  0xb8   : > { %v559_v21 = vpop.f32.mrf.mxu0  ;;  %v498_v22 = vpop.f32.mrf.mxu2 }
  0xb9   : > { %v532_v23 = vpop.f32.mrf.mxu3  ;;  %v502_v24 = vadd.f32 %v498_v22, %v468_v20 }
  0xbb   : > { %v536_v25 = vadd.f32 %v532_v23, %v502_v24 }
  0xbd   : > { %v563_v28 = vadd.f32 %v559_v21, %v536_v25 }
  0xbf   : > { %v565_v29 = vadd.f32 %v564_v26, %v563_v28 }
  0xc0   : > { %v561_v30 = vpop.f32.mrf.mxu0  ;;  %v500_v31 = vpop.f32.mrf.mxu2 }
  0xc1   : > { %v534_v32 = vpop.f32.mrf.mxu3  ;;  %567 = vst.msk [vmem:[#allocation2] sm:$0xff] %vm295_vm2, %v565_v29 }
  0xc8   : > { %v571_v36 = vld [vmem:[#allocation2] sm:$0xff] }
  0xc9   : > { %v576_v37 = vadd.f32 %v867_v34, %v571_v36 }
  0xcb   : > { %v577_v39 = vsel %vm295_vm2, %v576_v37, 0.0  ;;  %v594_v40 = vmax.f32 %v576_v37, 0.0 }
  0xcc   : > { %v578_v41 = vrot.slane %v577_v39, 4 }
  0xcd   : > { %v595_v42 = vpack.c.bf16 %v594_v40, %v594_v40 }
  0xce   : > { %v579_v44 = vadd.f32 %v578_v41, %v577_v39 }
  0xcf   : > { %v600_v45 = vrot.slane %v595_v42, 6 }
  0xd0   : > { %v580_v46 = vrot.slane %v579_v44, 2 }
  0xd1   : > { %v601_v47 = vrot.slane %v600_v45, 4  ;;  %605 = vst.msk [vmem:[%s1104_s14] sm:$0xc] %vm604_vm4, %v600_v45 }
  0xd2   : > { %v581_v49 = vadd.f32 %v580_v46, %v579_v44 }
  0xd3   : > { %607 = vst.msk [vmem:[%s1104_s14 + $0x4] sm:$0x3] %vm606_vm5, %v601_v47 }
  0xd4   : > { %v582_v50 = vrot.slane %v581_v49, 1 }
  0xd6   : > { %v583_v52 = vadd.f32 %v582_v50, %v581_v49 }
  0xd8   : > { %v591_v53 = vmul.f32 %v590_v51, %v583_v52 }
  0xda   : > { %593 = vst.msk [vmem:[%s263_s30] sm:$0x1] %vm592_vm7, %v591_v53 }
  0xdb   : > { %897 = shalt.err (!%p894_p5)
}
  0xdc   : > { %809 = dma.vmem_to_hbm [thread:$0]  (%p1018_p4), %s632_s5, 16, %s634_s6, %s617_s7  }
  0xdd PF: > { %p815_p6 = scmp.ge.s32.totalorder %s948_s20, 2  ;;  %s656_s9 = sand.u32 1, %s928_s15  }
  0xde   : > { %s657_s21 = scalar_lea.sflag [#allocation4], %s656_s9 }
  0xdf   : > { %p812_p7 = pnand %p815_p6, %p1025_p8 }
  0xe1   : > { %p813_p9 = pneg %p812_p7 }
  0xe3   : > { %923 = dma.done.wait (%p813_p9), %s657_s21, 16  }
  0xe4   : > { %925 = vsyncadd (%p813_p9), %s657_s21, 4294967280  ;;  %s18_s20 = sadd.s32 1, %s948_s20   ;;  %s1159_s15 = smov %s932_s16 }
  0xe5   : > { %p15_p10 = scmp.ge.s32.totalorder %s18_s20, 4   ;;  %s1160_s16 = smov %s936_s17 }
  0xe6   : > { %s1161_s17 = smov %s1031_s28  ;;  %s1162_s18 = smov %s944_s19 }
  0xe7   : > { %s1163_s19 = smov %s1165_s23  ;;  %17 = sbr.rel (!%p15_p10) target bundleno = 4 (0x4), region = 102 }
  0xec   :  { %662 = vsyncpa [#allocation4], 1 }
  0xed   :  { %664 = vsyncpa [#allocation4 + $0x1], 1 }

// kernel: basic_block1d.7
= control target key start
LH: loop header
LB: loop body
LE: loop exit
PB: predicated region body
PF: predicated region fallthrough
CT: control target
= control target key end

     0   :  { %s1076_s15 = smov 0   ;;  %s1078_s16 = smov 0   ;;  %s1196_s0 = inlined_call_operand.vmem [shape: bf16[2,1,16,32], index: 0, kind: input, shape index: {}]   ;;  %s1197_s1 = inlined_call_operand.vmem [shape: bf16[9,32,32], index: 1, kind: input, shape index: {}]   ;;  %s1198_s2 = inlined_call_operand.vmem [shape: f32[1,32], index: 2, kind: input, shape index: {}]   ;;  %s1199_s3 = inlined_call_operand.vmem [shape: bf16[2,8,32], index: 3, kind: output, shape index: {0}]   ;;  %s1200_s4 = inlined_call_operand.vmem [shape: f32[2,1,32], index: 4, kind: output, shape index: {1}]  }
   0x1   :  { %s1080_s17 = smov 0  }
   0x2 LB: > { %s34_s18 = sadd.s32 1, %s1043_s16  ;;  %p858_p0 = scmp.ge.s32.totalorder %s1047_s17, 1  ;;  %s1047_s17 = sphi %s1080_s17, %s15_s17   ;;  %s1043_s16 = sphi %s1078_s16, %s1202_s16   ;;  %s1039_s15 = sphi %s1076_s15, %s1201_s15  }
   0x3   : > { %p36_p1 = scmp.ge.s32.totalorder %s34_s18, 2  ;;  %p217_p2 = scmp.lt.s32.totalorder %s1047_s17, 3 }
   0x5   : > { %s1204_s18 = smov (%p36_p1, %s34_s18), 0  ;;  %p218_p3 = pnand %p858_p0, %p217_p2 }
   0x6   : > { %p265_p4 = scmp.lt.s32.totalorder (!%p218_p3), %s1039_s15, 1 }
   0x7   : > { %221 = sbr.rel (%p218_p3) target bundleno = 216 (0xd8), region = 32 }
   0xc   : > { %v983_v0 = vld [vmem:[%s1197_s1 + $0x28] sm:$0xff]  ;;  %v981_v1 = vld [vmem:[%s1197_s1 + $0x18] sm:$0xff]  ;;  %v982_v4 = vld [vmem:[%s1197_s1 + $0x20] sm:$0xff]  ;;  %s1206_s15 = smov (!%p265_p4, %s1039_s15), 1  ;;  %vm303_vm0 = vcmask 261120   ;;  %vm704_vm1 = vcmask 257024  }
   0xd   : > { %v979_v2 = vld [vmem:[%s1197_s1 + $0x8] sm:$0xff]  ;;  %v985_v3 = vld [vmem:[%s1197_s1 + $0x38] sm:$0xff]  ;;  %416 = vmatpush.bf16.msra.mxu2 %v983_v0  ;;  %350 = vmatpush.bf16.msra.mxu0 %v981_v1  ;;  %v980_v5 = vld [vmem:[%s1197_s1 + $0x10] sm:$0xff]  ;;  %s977_s9 = sshll.u32 %s1206_s15, 3  ;;  %v1049_v0 = vmov 0.0   ;;  %s861_s13 = sshll.u32 %s1206_s15, 2 }
   0xe   : > { %378 = vmatpush.bf16.msra.mxu1 %v979_v2  ;;  %462 = vmatpush.bf16.msra.mxu3 %v985_v3  ;;  %v978_v6 = vld [vmem:[%s1197_s1] sm:$0xff]  ;;  %v984_v7 = vld [vmem:[%s1197_s1 + $0x30] sm:$0xff]  ;;  %v987_v8 = vld [vmem:[%s1197_s1 + $0x48] sm:$0xff]  ;;  %s1130_s20 = scalar_lea.vmem %s1196_s0, %s977_s9  ;;  %304 = vst.msk [vmem:[#allocation2] sm:$0xff] %vm303_vm0, %v1049_v0  ;;  %s297_s23 = scalar_lea.vmem %s1200_s4, %s1206_s15  ;;  %vm701_vm3 = vcmask 253952  }
   0xf   : > { %v991_v9 = vld [vmem:[%s1197_s1 + $0x68] sm:$0xff]  ;;  %v993_v10 = vld [vmem:[%s1197_s1 + $0x78] sm:$0xff]  ;;  %v310_v12 = vld [vmem:[%s1130_s20 + $0x4] sm:$0x1] }
  0x10   : > { %v989_v11 = vld [vmem:[%s1197_s1 + $0x58] sm:$0xff]  ;;  %v385_v13 = vld [vmem:[%s1130_s20] sm:$0xe]  ;;  %v319_v15 = vunpack.c.l.b16 %v310_v12  ;;  %v424_v18 = vld [vmem:[%s1130_s20 + $0x4] sm:$0x3] }
  0x11   : > { %417 = vmatpush.bf16.msra.mxu2 %v982_v4  ;;  %351 = vmatpush.bf16.msra.mxu0 %v980_v5  ;;  %v305_v14 = vld [vmem:[%s1130_s20] sm:$0xf]  ;;  %v392_v16 = vunpack.c.l.b16 %v385_v13  ;;  %v509_v20 = vld [vmem:[%s1130_s20 + $0x4] sm:$0x7]  ;;  %v431_v21 = vunpack.c.l.b16 %v424_v18  ;;  %v992_v26 = vld [vmem:[%s1197_s1 + $0x70] sm:$0xff] }
  0x12   : > { %379 = vmatpush.bf16.msra.mxu1 %v978_v6  ;;  %463 = vmatpush.bf16.msra.mxu3 %v984_v7  ;;  %v318_v17 = vunpack.c.l.b16 %v305_v14  ;;  %v986_v19 = vld [vmem:[%s1197_s1 + $0x40] sm:$0xff]  ;;  %v516_v27 = vunpack.c.l.b16 %v509_v20  ;;  %v988_v31 = vld [vmem:[%s1197_s1 + $0x50] sm:$0xff]  ;;  %v995_v44 = vld [vmem:[%s1197_s1 + $0x88] sm:$0xff] }
  0x13   : > { %v990_v22 = vld [vmem:[%s1197_s1 + $0x60] sm:$0xff]  ;;  %v393_v24 = vpack.c.b16 %v319_v15, %v392_v16  ;;  %v432_v29 = vpack.c.b16 %v431_v21, %v392_v16 }
  0x14   : > { %v470_v23 = vld [vmem:[%s1130_s20] sm:$0xc]  ;;  %v320_v25 = vpack.c.b16 %v319_v15, %v318_v17  ;;  %v594_v35 = vld [vmem:[%s1130_s20 + $0x4] sm:$0xf] }
  0x15   : > { %501 = vmatpush.bf16.msrb.mxu0 %v987_v8  ;;  %586 = vmatpush.bf16.msrb.mxu2 %v991_v9  ;;  %v477_v28 = vunpack.c.l.b16 %v470_v23  ;;  %v555_v30 = vld [vmem:[%s1130_s20] sm:$0x8]  ;;  %v394_v32 = vrot.slane %v393_v24, 1  ;;  %v434_v36 = vshrl.u32 %v432_v29, 16  ;;  %v437_v37 = vshll.u32 %v432_v29, 16  ;;  %s291_s20 = scalar_lea.vmem %s1199_s3, %s861_s13 }
  0x16   : > { %632 = vmatpush.bf16.msrb.mxu3 %v993_v10  ;;  %547 = vmatpush.bf16.msrb.mxu1 %v989_v11  ;;  %v322_v33 = vshrl.u32 %v320_v25, 16  ;;  %v324_v34 = vshll.u32 %v320_v25, 16  ;;  %v562_v42 = vunpack.c.l.b16 %v555_v30  ;;  %v601_v43 = vunpack.c.l.b16 %v594_v35  ;;  %v994_v52 = vld [vmem:[%s1197_s1 + $0x80] sm:$0xff] }
  0x17   : > { %883 = vmatmul.msk.bf16.vlgmr.msra.gmra.mxu1 %vm303_vm0, %v305_v14  ;;  %896 = vmatmul.msk.bf16.vlgmr.msra.gmra.mxu2 %vm303_vm0, %v394_v32  ;;  %v517_v39 = vpack.c.b16 %v516_v27, %v477_v28  ;;  %v436_v40 = vrot.slane %v434_v36, 1  ;;  %v439_v41 = vrot.slane %v437_v37, 2  ;;  %v478_v58 = vpack.c.b16 %v431_v21, %v477_v28  ;;  %v674_v24 = vld [vmem:[#allocation2] sm:$0xff] }
  0x18   : > { %v326_v38 = vrot.slane %v324_v34, 1  ;;  %v602_v49 = vpack.c.b16 %v601_v43, %v562_v42  ;;  %v563_v53 = vpack.c.b16 %v516_v27, %v562_v42  ;;  %v1050_v25 = vmov 8.0   ;;  %v1022_v30 = vld [vmem:[%s1198_s2] ss:$0 sm:$0xff] }
  0x19   : > { %502 = vmatpush.bf16.msrb.mxu0 %v986_v19  ;;  %587 = vmatpush.bf16.msrb.mxu2 %v990_v22  ;;  %v519_v46 = vshrl.u32 %v517_v39, 16  ;;  %v522_v47 = vshll.u32 %v517_v39, 16  ;;  %v440_v48 = vor.u32 %v439_v41, %v436_v40  ;;  %v479_v61 = vrot.slane %v478_v58, 2 }
  0x1a   : > { %633 = vmatpush.bf16.msrb.mxu3 %v992_v26  ;;  %548 = vmatpush.bf16.msrb.mxu1 %v988_v31  ;;  %v327_v45 = vor.u32 %v326_v38, %v322_v33  ;;  %v604_v54 = vshrl.u32 %v602_v49, 16  ;;  %v607_v55 = vshll.u32 %v602_v49, 16  ;;  %v564_v57 = vrot.slane %v563_v53, 3 }
  0x1b   : > { %909 = vmatmul.msk.bf16.vlgmr.msra.gmra.mxu3 %vm303_vm0, %v440_v48  ;;  %v521_v50 = vrot.slane %v519_v46, 2  ;;  %v524_v51 = vrot.slane %v522_v47, 3  ;;  %1023 = vrcp.f32 %v1050_v25 }
  0x1c   : > { %874 = vmatmul.msk.bf16.vlgmr.msra.gmra.mxu0 %vm303_vm0, %v327_v45  ;;  %v606_v59 = vrot.slane %v604_v54, 3  ;;  %v609_v60 = vrot.slane %v607_v55, 4 }
  0x1d   : > { %666 = vmatpush.bf16.msra.mxu0 %v995_v44  ;;  %v525_v56 = vor.u32 %v524_v51, %v521_v50 }
  0x1e   : > { %v610_v62 = vor.u32 %v609_v60, %v606_v59 }
  0x21   : > { %667 = vmatpush.bf16.msra.mxu0 %v994_v52  ;;  %v1024_v28 = vpop.eup %1023 }
  0x22   : > { %v694_v31 = vmul.f32 8.0, %v1024_v28  ;;  %vm698_vm2 = vweird.f32 %v1024_v28 }
  0x24   : > { %v695_v34 = vsub.f32 1.0, %v694_v31 }
  0x26   : > { %v696_v38 = vmul.f32 %v1024_v28, %v695_v34 }
  0x27   : > { %935 = vmatmul.msk.bf16.vlgmr.msrb.gmra.mxu1 %vm303_vm0, %v525_v56  ;;  %948 = vmatmul.msk.bf16.vlgmr.msrb.gmra.mxu2 %vm303_vm0, %v564_v57 }
  0x28   : > { %v697_v41 = vadd.f32 %v1024_v28, %v696_v38 }
  0x2a   : > { %v699_v44 = vsel %vm698_vm2, %v1024_v28, %v697_v41 }
  0x2b   : > { %961 = vmatmul.msk.bf16.vlgmr.msrb.gmra.mxu3 %vm303_vm0, %v610_v62 }
  0x2c   : > { %922 = vmatmul.msk.bf16.vlgmr.msrb.gmra.mxu0 %vm303_vm0, %v479_v61 }
  0x3c   : > { %974 = vmatmul.msk.bf16.vlgmr.msra.gmra.mxu0 %vm303_vm0, %v594_v35 }
  0x94   : > { %v381_v63 = vpop.f32.mrf.mxu1 }
  0x99   : > { %v353_v1 = vpop.f32.mrf.mxu0 }
  0x9a   : > { %v419_v3 = vpop.f32.mrf.mxu2  ;;  %v382_v8 = vadd.f32 %v381_v63, %v353_v1 }
  0x9c   : > { %v383_v2 = vpop.f32.mrf.mxu1  ;;  %v423_v9 = vadd.f32 %v419_v3, %v382_v8 }
  0x9e   : > { %v465_v4 = vpop.f32.mrf.mxu3 }
  0x9f   : > { %v469_v12 = vadd.f32 %v465_v4, %v423_v9 }
  0xa1   : > { %v355_v5 = vpop.f32.mrf.mxu0 }
  0xa2   : > { %v421_v7 = vpop.f32.mrf.mxu2 }
  0xa4   : > { %v550_v6 = vpop.f32.mrf.mxu1 }
  0xa6   : > { %v467_v10 = vpop.f32.mrf.mxu3 }
  0xa9   : > { %v504_v11 = vpop.f32.mrf.mxu0 }
  0xaa   : > { %v589_v14 = vpop.f32.mrf.mxu2  ;;  %v508_v15 = vadd.f32 %v504_v11, %v469_v12 }
  0xac   : > { %v552_v13 = vpop.f32.mrf.mxu1  ;;  %v554_v16 = vadd.f32 %v550_v6, %v508_v15 }
  0xae   : > { %v635_v17 = vpop.f32.mrf.mxu3  ;;  %v593_v20 = vadd.f32 %v589_v14, %v554_v16 }
  0xb0   : > { %v639_v21 = vadd.f32 %v635_v17, %v593_v20 }
  0xb1   : > { %v506_v18 = vpop.f32.mrf.mxu0 }
  0xb2   : > { %v591_v19 = vpop.f32.mrf.mxu2 }
  0xb6   : > { %v637_v22 = vpop.f32.mrf.mxu3 }
  0xb9   : > { %v669_v23 = vpop.f32.mrf.mxu0 }
  0xba   : > { %v673_v26 = vadd.f32 %v669_v23, %v639_v21 }
  0xbc   : > { %v675_v27 = vadd.f32 %v674_v24, %v673_v26 }
  0xbe   : > { %676 = vst.msk [vmem:[#allocation2] sm:$0xff] %vm303_vm0, %v675_v27 }
  0xc1   : > { %v671_v29 = vpop.f32.mrf.mxu0 }
  0xc5   : > { %v680_v32 = vld [vmem:[#allocation2] sm:$0xff] }
  0xc6   : > { %v685_v33 = vadd.f32 %v1022_v30, %v680_v32 }
  0xc8   : > { %v686_v35 = vsel %vm303_vm0, %v685_v33, 0.0  ;;  %v703_v36 = vpack.c.bf16 %v685_v33, %v685_v33 }
  0xc9   : > { %v687_v37 = vrot.slane %v686_v35, 4 }
  0xca   : > { %705 = vst.msk [vmem:[%s291_s20] sm:$0xf] %vm704_vm1, %v703_v36 }
  0xcb   : > { %v688_v39 = vadd.f32 %v687_v37, %v686_v35 }
  0xcd   : > { %v689_v40 = vrot.slane %v688_v39, 2 }
  0xcf   : > { %v690_v42 = vadd.f32 %v689_v40, %v688_v39 }
  0xd1   : > { %v691_v43 = vrot.slane %v690_v42, 1 }
  0xd3   : > { %v692_v45 = vadd.f32 %v691_v43, %v690_v42 }
  0xd5   : > { %v700_v46 = vmul.f32 %v699_v44, %v692_v45 }
  0xd7   : > { %702 = vst.msk [vmem:[%s297_s23] sm:$0x1] %vm701_vm3, %v700_v46 }
  0xd8 PF: > { %s15_s17 = sadd.s32 1, %s1047_s17   ;;  %s1201_s15 = smov %s1043_s16 }
  0xd9   : > { %p12_p5 = scmp.ge.s32.totalorder %s15_s17, 4   ;;  %s1202_s16 = smov %s1204_s18 }
  0xdb   :  { %14 = sbr.rel (!%p12_p5) target bundleno = 2 (0x2), region = 96 }

// kernel: basic_block1d.9
= control target key start
LH: loop header
LB: loop body
LE: loop exit
PB: predicated region body
PF: predicated region fallthrough
CT: control target
= control target key end

     0   :  { %s205_s6 = smov 0   ;;  %s225_s0 = inlined_call_operand.vmem [shape: bf16[2,2,8,4], index: 0, kind: input, shape index: {}]   ;;  %s226_s1 = inlined_call_operand.vmem [shape: bf16[2,8,4], index: 1, kind: output, shape index: {}]  }
   0x1 LB: > { %s177_s7 = sadd.s32 4294967295, %s207_s6   ;;  %p181_p0 = scmp.ge.s32.totalorder %s207_s6, 1  ;;  %s207_s6 = sphi %s205_s6, %s11_s6  }
   0x2   : > { %p87_p1 = scmp.lt.s32.totalorder %s207_s6, 3 }
   0x4   : > { %p88_p2 = pnand %p181_p0, %p87_p1 }
   0x5   : > { %p106_p3 = scmp.lt.s32.totalorder (!%p88_p2), %s177_s7, 1 }
   0x6   : > { %91 = sbr.rel (%p88_p2) target bundleno = 22 (0x16), region = 24 }
   0xb   : > { %s228_s7 = smov (!%p106_p3, %s177_s7), 1  ;;  %vm122_vm0 = vcmask 27648  }
   0xc   : > { %s188_s8 = sshll.u32 %s228_s7, 3  ;;  %s184_s12 = sshll.u32 %s228_s7, 2 }
   0xd   : > { %s110_s11 = scalar_lea.vmem %s225_s0, %s188_s8  ;;  %s114_s15 = scalar_lea.vmem %s226_s1, %s184_s12 }
   0xe   : > { %v190_v0 = vld [vmem:[%s110_s11] sm:$0xff]  }
   0xf   : > { %v191_v1 = vunpack.c.l.bf16 %v190_v0  ;;  %v192_v2 = vunpack.c.h.bf16 %v190_v0 }
  0x11   : > { %v120_v3 = vmax.f32 %v191_v1, %v192_v2 }
  0x13   : > { %v121_v4 = vpack.c.bf16 %v120_v3, %v120_v3 }
  0x15   : > { %123 = vst.msk [vmem:[%s114_s15] sm:$0xf] %vm122_vm0, %v121_v4 }
  0x16 PF: > { %s11_s6 = sadd.s32 1, %s207_s6  }
  0x17   : > { %p8_p4 = scmp.ge.s32.totalorder %s11_s6, 4  }
  0x19   :  { %10 = sbr.rel (!%p8_p4) target bundleno = 1 (0x1), region = 55 }

// kernel: basic_block1d.11
= control target key start
LH: loop header
LB: loop body
LE: loop exit
PB: predicated region body
PF: predicated region fallthrough
CT: control target
= control target key end

     0   :  { %8 = vsyncpa [#allocation3], 0  ;;  %s629_s0 = inlined_call_operand.vmem [shape: bf16[2,8,32], index: 0, kind: input, shape index: {}]   ;;  %s630_s1 = inlined_call_operand.vmem [shape: f32[2,1,32], index: 1, kind: input, shape index: {}]   ;;  %s631_s2 = inlined_call_operand.vmem [shape: bf16[2,8,32], index: 2, kind: input, shape index: {}]   ;;  %s632_s3 = inlined_call_operand.hbm [shape: f32[2,8,32], index: 3, kind: output, shape index: {}]  }
   0x1   :  { %10 = vsyncpa [#allocation3 + $0x1], 0  ;;  %s526_s12 = smov 0   ;;  %s528_s13 = smov 0  }
   0x2   :  { %s530_s14 = smov 0   ;;  %s532_s15 = smov 0  }
   0x3   :  { %s534_s16 = smov 0   ;;  %s536_s17 = smov 0  }
   0x4 LB: > { %s358_s18 = sadd.s32 4294967295, %s504_s17   ;;  %s359_s19 = sadd.s32 4294967294, %s504_s17   ;;  %s504_s17 = sphi %s536_s17, %s16_s17   ;;  %s500_s16 = sphi %s534_s16, %s639_s16   ;;  %s496_s15 = sphi %s532_s15, %s638_s15   ;;  %s492_s14 = sphi %s530_s14, %s637_s14   ;;  %s488_s13 = sphi %s528_s13, %s636_s13   ;;  %s484_s12 = sphi %s526_s12, %s635_s12  }
   0x5   : > { %s28_s20 = sadd.s32 1, %s500_s16  ;;  %s119_s21 = sadd.s32 1, %s492_s14 }
   0x6   : > { %p30_p0 = scmp.ge.s32.totalorder %s28_s20, 2  ;;  %p129_p1 = scmp.ne.s32.totalorder %s492_s14, %s488_s13 }
   0x7   : > { %p130_p2 = scmp.eq.s32.totalorder %s358_s18, 1  ;;  %p135_p3 = scmp.ne.s32.totalorder %s488_s13, %s484_s12 }
   0x8   : > { %s641_s20 = smov (%p30_p0, %s28_s20), 0  ;;  %p136_p5 = scmp.eq.s32.totalorder %s359_s19, 1 }
   0x9   : > { %p566_p4 = por %p130_p2, %p129_p1  ;;  %s114_s23 = ssub.s32 %s500_s16, %s641_s20 }
   0xa   : > { %p362_p6 = scmp.ge.s32.totalorder %s504_s17, 1  ;;  %p117_p7 = scmp.eq.s32.totalorder %s114_s23, 0 }
   0xb   : > { %p573_p8 = por %p136_p5, %p135_p3  ;;  %p180_p9 = scmp.lt.s32.totalorder %s504_s17, 3 }
   0xc   : > { %s579_s25 = scalar_select %p117_p7, %s492_s14, %s119_s21  }
   0xd   : > { %p181_p10 = pnand %p362_p6, %p180_p9 }
   0xe   : > { %p216_p11 = scmp.lt.s32.totalorder (!%p181_p10), %s496_s15, 1  ;;  %s213_s26 = sand.u32 (!%p181_p10), 1, %s488_s13  }
   0xf   : > { %184 = sbr.rel (%p181_p10) target bundleno = 36 (0x24), region = 32  ;;  %s363_s28 = sshll.u32 (!%p181_p10), %s213_s26, 3 }
  0x10   : > { %s367_s29 = sshll.u32 (!%p181_p10), %s496_s15, 3  ;;  %s215_s23 = scalar_lea.vmem (!%p181_p10), [#allocation2], %s363_s28 }
  0x11   : > { %s258_s21 = scalar_lea.hbm (!%p181_p10), %s632_s3, %s367_s29  ;;  %s446_s28 = scalar_lea.hbm (!%p181_p10), %s632_s3, 16 }
  0x12   : > { %s262_s4 = sshll.u32 (!%p181_p10), %s258_s21, 4  ;;  %s263_s4 = int_to_ptr.hbm [resolvable:$true] %s262_s4 }
  0x13   : > { %s440_s5 = sshra.s32 (!%p181_p10), %s263_s4, 4  ;;  %s441_s5 = int_to_ptr.hbm [resolvable:$true] %s440_s5 }
  0x14   : > { %s217_s27 = scalar_select %p216_p11, %s496_s15, 1  ;;  %vm244_vm0 = vcmask 261120  }
  0x15   : > { %p447_p1 = scmp.lt.s32.totalorder %s441_s5, %s632_s3 }
  0x16   : > { %s364_s30 = sshll.u32 %s217_s27, 2  ;;  %s225_s6 = scalar_lea.vmem %s630_s1, %s217_s27 }
  0x17   : > { %s222_s9 = scalar_lea.vmem %s629_s0, %s364_s30  ;;  %s232_s18 = scalar_lea.vmem %s631_s2, %s364_s30  ;;  %v425_v0 = vld [vmem:[%s225_s6] ss:$0 sm:$0xff] }
  0x18   : > { %v233_v1 = vld [vmem:[%s222_s9] sm:$0xf]  ;;  %s260_s27 = sshll.u32 %s215_s23, 4  ;;  %s247_s30 = scalar_lea.sflag [#allocation3], %s213_s26  ;;  %s261_s27 = int_to_ptr.vmem [resolvable:$true] %s260_s27 }
  0x19   : > { %v240_v2 = vld [vmem:[%s232_s18] sm:$0xf]  ;;  %v234_v3 = vunpack.c.l.bf16 %v233_v1  ;;  %s442_s6 = scalar_lea.hbm %s441_s5, 8 }
  0x1a   : > { %v241_v4 = vunpack.c.l.bf16 %v240_v2  ;;  %p443_p12 = scmp.ne.s32.totalorder %s441_s5, %s442_s6  ;;  %p448_p2 = scmp.lt.s32.totalorder %s446_s28, %s442_s6 }
  0x1b   : > { %v239_v5 = vmul.f32 %v425_v0, %v234_v3 }
  0x1c   : > { %p444_p13 = pnand %p443_p12, %p566_p4  ;;  %p449_p3 = por %p448_p2, %p447_p1 }
  0x1d   : > { %v242_v6 = vadd.f32 %v241_v4, %v239_v5 }
  0x1e   : > { %p445_p0 = pneg %p444_p13 }
  0x1f   : > { %v243_v7 = vmax.f32 %v242_v6, 0.0 }
  0x20   : > { %p450_p5 = pnand %p449_p3, %p445_p0 }
  0x21   : > { %245 = vst.msk [vmem:[%s215_s23] sm:$0xff] %vm244_vm0, %v243_v7 }
  0x22   : > { %453 = shalt.err (!%p450_p5)
}
  0x23   : > { %370 = dma.vmem_to_hbm [thread:$0]  (%p566_p4), %s261_s27, 128, %s263_s4, %s247_s30  }
  0x24 PF: > { %p376_p6 = scmp.ge.s32.totalorder %s504_s17, 2  ;;  %s274_s26 = sand.u32 1, %s484_s12  }
  0x25   : > { %s275_s10 = scalar_lea.sflag [#allocation3], %s274_s26 }
  0x26   : > { %p373_p7 = pnand %p376_p6, %p573_p8 }
  0x28   : > { %p374_p9 = pneg %p373_p7 }
  0x2a   : > { %479 = dma.done.wait (%p374_p9), %s275_s10, 128  }
  0x2b   : > { %481 = vsyncadd (%p374_p9), %s275_s10, 4294967168  ;;  %s16_s17 = sadd.s32 1, %s504_s17   ;;  %s635_s12 = smov %s488_s13 }
  0x2c   : > { %p13_p10 = scmp.ge.s32.totalorder %s16_s17, 4   ;;  %s636_s13 = smov %s492_s14 }
  0x2d   : > { %s637_s14 = smov %s579_s25  ;;  %s638_s15 = smov %s500_s16 }
  0x2e   : > { %s639_s16 = smov %s641_s20  ;;  %15 = sbr.rel (!%p13_p10) target bundleno = 4 (0x4), region = 73 }
  0x33   :  { %281 = vsyncpa [#allocation3], 1 }
  0x34   :  { %283 = vsyncpa [#allocation3 + $0x1], 1 }

// kernel: basic_block1d.10
= control target key start
LH: loop header
LB: loop body
LE: loop exit
PB: predicated region body
PF: predicated region fallthrough
CT: control target
= control target key end

     0   :  { %10 = vsyncpa [#allocation4], 0  ;;  %s791_s0 = inlined_call_operand.vmem [shape: bf16[2,1,8,4], index: 0, kind: input, shape index: {}]   ;;  %s792_s1 = inlined_call_operand.vmem [shape: bf16[1,4,32], index: 1, kind: input, shape index: {}]   ;;  %s793_s2 = inlined_call_operand.vmem [shape: f32[1,32], index: 2, kind: input, shape index: {}]   ;;  %s794_s3 = inlined_call_operand.vmem [shape: bf16[2,8,32], index: 3, kind: output, shape index: {0}]   ;;  %s795_s4 = inlined_call_operand.hbm [shape: f32[2,1,32], index: 4, kind: output, shape index: {1}]  }
   0x1   :  { %12 = vsyncpa [#allocation4 + $0x1], 0  ;;  %s682_s15 = smov 0   ;;  %s684_s16 = smov 0  }
   0x2   :  { %s686_s17 = smov 0   ;;  %s688_s18 = smov 0  }
   0x3   :  { %s690_s19 = smov 0   ;;  %s692_s20 = smov 0  }
   0x4 LB: > { %s503_s21 = sadd.s32 4294967295, %s653_s20   ;;  %s504_s22 = sadd.s32 4294967294, %s653_s20   ;;  %s653_s20 = sphi %s692_s20, %s18_s20   ;;  %s649_s19 = sphi %s690_s19, %s802_s19   ;;  %s645_s18 = sphi %s688_s18, %s801_s18   ;;  %s641_s17 = sphi %s686_s17, %s800_s17   ;;  %s637_s16 = sphi %s684_s16, %s799_s16   ;;  %s633_s15 = sphi %s682_s15, %s798_s15  }
   0x5   : > { %s37_s23 = sadd.s32 1, %s649_s19  ;;  %s156_s24 = sadd.s32 1, %s641_s17 }
   0x6   : > { %p39_p0 = scmp.ge.s32.totalorder %s37_s23, 2  ;;  %p166_p1 = scmp.ne.s32.totalorder %s641_s17, %s637_s16 }
   0x7   : > { %p167_p2 = scmp.eq.s32.totalorder %s503_s21, 1  ;;  %p172_p3 = scmp.ne.s32.totalorder %s637_s16, %s633_s15 }
   0x8   : > { %s804_s23 = smov (%p39_p0, %s37_s23), 0  ;;  %p173_p5 = scmp.eq.s32.totalorder %s504_s22, 1 }
   0x9   : > { %p722_p4 = por %p167_p2, %p166_p1  ;;  %s151_s26 = ssub.s32 %s649_s19, %s804_s23 }
   0xa   : > { %p509_p6 = scmp.ge.s32.totalorder %s653_s20, 1  ;;  %p154_p7 = scmp.eq.s32.totalorder %s151_s26, 0 }
   0xb   : > { %p729_p8 = por %p173_p5, %p172_p3  ;;  %p217_p9 = scmp.lt.s32.totalorder %s653_s20, 3 }
   0xc   : > { %s735_s28 = scalar_select %p154_p7, %s641_s17, %s156_s24  }
   0xd   : > { %p218_p10 = pnand %p509_p6, %p217_p9 }
   0xe   : > { %p261_p11 = scmp.lt.s32.totalorder (!%p218_p10), %s645_s18, 1  ;;  %s259_s21 = sand.u32 (!%p218_p10), 1, %s637_s16  }
   0xf   : > { %221 = sbr.rel (%p218_p10) target bundleno = 181 (0xb5), region = 32  ;;  %s368_s26 = scalar_lea.hbm (!%p218_p10), %s795_s4, %s645_s18 }
  0x10   : > { %s260_s29 = scalar_lea.vmem (!%p218_p10), [#allocation3], %s259_s21  ;;  %s595_s10 = scalar_lea.hbm (!%p218_p10), %s795_s4, 2 }
  0x11   : > { %s370_s30 = sshll.u32 (!%p218_p10), %s260_s29, 4  ;;  %s371_s30 = int_to_ptr.vmem [resolvable:$true] %s370_s30 }
  0x14   : > { %v293_v0 = vld [vmem:[%s792_s1] sm:$0x3]  ;;  %vm298_vm0 = vcmask 1041408   ;;  %vm290_vm1 = vcmask 261120   ;;  %s262_s5 = scalar_select %p261_p11, %s645_s18, 1  ;;  %v655_v2 = vmov 0.0  }
  0x15   : > { %v300_v1 = vsel %vm298_vm0, %v293_v0, 0  ;;  %291 = vst.msk [vmem:[#allocation2] sm:$0xff] %vm290_vm1, %v655_v2  ;;  %vm294_vm2 = vcmask 31744   ;;  %v656_v5 = vmov 8.0   ;;  %v572_v9 = vld [vmem:[%s793_s2] ss:$0 sm:$0xff] }
  0x16   : > { %309 = vmatpush.bf16.msra.mxu0 %v300_v1  ;;  %s510_s6 = sshll.u32 %s262_s5, 2  ;;  %573 = vrcp.f32 %v656_v5  ;;  %vm346_vm3 = vcmask 257024   ;;  %s372_s5 = sshll.u32 %s368_s26, 4  ;;  %vm343_vm5 = vcmask 253952   ;;  %s373_s5 = int_to_ptr.hbm [resolvable:$true] %s372_s5 }
  0x17   : > { %s267_s9 = scalar_lea.vmem %s791_s0, %s510_s6  ;;  %s284_s14 = scalar_lea.vmem %s794_s3, %s510_s6 }
  0x18   : > { %v292_v3 = vld [vmem:[%s267_s9] sm:$0xf]  ;;  %s356_s6 = scalar_lea.sflag [#allocation4], %s259_s21  ;;  %s589_s7 = sshra.s32 %s373_s5, 4  ;;  %s590_s7 = int_to_ptr.hbm [resolvable:$true] %s589_s7 }
  0x19   : > { %512 = vmatmul.msk.bf16.vlgmr.msra.gmra.mxu0 %vm294_vm2, %v292_v3  ;;  %s591_s8 = scalar_lea.hbm %s590_s7, 1  ;;  %p596_p1 = scmp.lt.s32.totalorder %s590_s7, %s795_s4 }
  0x1a   : > { %p592_p12 = scmp.ne.s32.totalorder %s590_s7, %s591_s8  ;;  %p597_p2 = scmp.lt.s32.totalorder %s595_s10, %s591_s8 }
  0x1c   : > { %v315_v4 = vld [vmem:[#allocation2] sm:$0xff]  ;;  %v574_v8 = vpop.eup %573  ;;  %p593_p13 = pnand %p592_p12, %p722_p4  ;;  %p598_p3 = por %p597_p2, %p596_p1 }
  0x1d   : > { %v336_v10 = vmul.f32 8.0, %v574_v8  ;;  %vm340_vm4 = vweird.f32 %v574_v8 }
  0x1e   : > { %p594_p0 = pneg %p593_p13 }
  0x1f   : > { %v337_v14 = vsub.f32 1.0, %v336_v10 }
  0x20   : > { %p599_p5 = pnand %p598_p3, %p594_p0 }
  0x21   : > { %v338_v18 = vmul.f32 %v574_v8, %v337_v14 }
  0x23   : > { %v339_v21 = vadd.f32 %v574_v8, %v338_v18 }
  0x25   : > { %v341_v24 = vsel %vm340_vm4, %v574_v8, %v339_v21 }
  0x96   : > { %v311_v6 = vpop.f32.mrf.mxu0 }
  0x97   : > { %v316_v7 = vadd.f32 %v315_v4, %v311_v6 }
  0x99   : > { %318 = vst.msk [vmem:[#allocation2] sm:$0xff] %vm290_vm1, %v316_v7 }
  0x9e   : > { %v313_v11 = vpop.f32.mrf.mxu0 }
  0xa0   : > { %v322_v12 = vld [vmem:[#allocation2] sm:$0xff] }
  0xa1   : > { %v327_v13 = vadd.f32 %v572_v9, %v322_v12 }
  0xa3   : > { %v328_v15 = vsel %vm290_vm1, %v327_v13, 0.0  ;;  %v345_v16 = vpack.c.bf16 %v327_v13, %v327_v13 }
  0xa4   : > { %v329_v17 = vrot.slane %v328_v15, 4 }
  0xa5   : > { %347 = vst.msk [vmem:[%s284_s14] sm:$0xf] %vm346_vm3, %v345_v16 }
  0xa6   : > { %v330_v19 = vadd.f32 %v329_v17, %v328_v15 }
  0xa8   : > { %v331_v20 = vrot.slane %v330_v19, 2 }
  0xaa   : > { %v332_v22 = vadd.f32 %v331_v20, %v330_v19 }
  0xac   : > { %v333_v23 = vrot.slane %v332_v22, 1 }
  0xae   : > { %v334_v25 = vadd.f32 %v333_v23, %v332_v22 }
  0xb0   : > { %v342_v26 = vmul.f32 %v341_v24, %v334_v25 }
  0xb2   : > { %344 = vst.msk [vmem:[%s260_s29] sm:$0x1] %vm343_vm5, %v342_v26 }
  0xb3   : > { %602 = shalt.err (!%p599_p5)
}
  0xb4   : > { %515 = dma.vmem_to_hbm [thread:$0]  (%p722_p4), %s371_s30, 16, %s373_s5, %s356_s6  }
  0xb5 PF: > { %p521_p6 = scmp.ge.s32.totalorder %s653_s20, 2  ;;  %s394_s13 = sand.u32 1, %s633_s15  }
  0xb6   : > { %s395_s14 = scalar_lea.sflag [#allocation4], %s394_s13 }
  0xb7   : > { %p518_p7 = pnand %p521_p6, %p729_p8 }
  0xb9   : > { %p519_p9 = pneg %p518_p7 }
  0xbb   : > { %628 = dma.done.wait (%p519_p9), %s395_s14, 16  }
  0xbc   : > { %630 = vsyncadd (%p519_p9), %s395_s14, 4294967280  ;;  %s18_s20 = sadd.s32 1, %s653_s20   ;;  %s798_s15 = smov %s637_s16 }
  0xbd   : > { %p15_p10 = scmp.ge.s32.totalorder %s18_s20, 4   ;;  %s799_s16 = smov %s641_s17 }
  0xbe   : > { %s800_s17 = smov %s735_s28  ;;  %s801_s18 = smov %s649_s19 }
  0xbf   : > { %s802_s19 = smov %s804_s23  ;;  %17 = sbr.rel (!%p15_p10) target bundleno = 4 (0x4), region = 93 }
  0xc4   :  { %400 = vsyncpa [#allocation4], 1 }
  0xc5   :  { %402 = vsyncpa [#allocation4 + $0x1], 1 }

</bundles_post_ra>
